<compile_context>
chip_gen: v7x
topology: tpu7x:2x2x1
jax: 0.10.0
libtpu: 0.0.40
codegen_flags: <defaults>
</compile_context>

<pallas_src>
import functools
import math

import jax
import jax.numpy as jnp
import numpy as np
from jax.experimental import pallas as pl
from jax.experimental.pallas import tpu as pltpu


# ---------------------------------------------------------------------------
# In-kernel erf (Abramowitz & Stegun 7.1.26, |err| < 1.5e-7) -- exact-GELU flavor,
# built only from ops that lower on Mosaic (exp / abs / mul / add / where / recip).
# ---------------------------------------------------------------------------
def _erf(x, approx_recip):
    a1, a2, a3, a4, a5 = 0.254829592, -0.284496736, 1.421413741, -1.453152027, 1.061405429
    p = 0.3275911
    sign = jnp.where(x >= 0.0, 1.0, -1.0)
    ax = jnp.abs(x)
    t = pl.reciprocal(1.0 + p * ax, approx=approx_recip)   # EUP when approx, exact for f32
    poly = ((((a5 * t + a4) * t + a3) * t + a2) * t + a1) * t
    return sign * (1.0 - poly * jnp.exp(-ax * ax))


def _gelu_exact(x, approx_recip):
    return 0.5 * x * (1.0 + _erf(x * (1.0 / math.sqrt(2.0)), approx_recip))


# ---------------------------------------------------------------------------
# Pallas kernel: grid = (batch, query_tile)
# ---------------------------------------------------------------------------
def self_block_kernel(desc_res_ref, desc_full_ref, enc_ref,
                      wqkv_ref, bqkv_ref,
                      wout_ref, bout_ref,
                      w1a_ref, w1b_ref, b1_ref, lng_ref, lnb_ref,
                      w2_ref, b2_ref,
                      out_ref,
                      q_scr, k_scr, v_scr,
                      *, num_heads, head_dim, tq, compute_dtype, exp_dtype, approx_recip):
    qt = pl.program_id(1)
    D = num_heads * head_dim
    cdt = compute_dtype
    inv_sqrt_hd = 1.0 / math.sqrt(head_dim)

    # --- once per batch element: full-sequence QKV + rotary, cached in VMEM scratch ---
    # (relies on the query-tile axis being the sequential, minormost grid axis so that
    #  qt == 0 fires at the start of every batch element)
    @pl.when(qt == 0)
    def _():
        # Lane-parity mask for rotate_half.  head_dim is even, so rotary pairs (2i, 2i+1)
        # never cross a head boundary in the head-major concatenated layout, and the
        # roll wrap-around lanes (0 and D-1) are always discarded by the parity select --
        # do NOT remove the even-head_dim assertion in the wrapper.
        lane = jax.lax.broadcasted_iota(jnp.int32, (1, D), 1)
        is_odd = (lane & 1) == 1

        def rotate_half(x):
            # (-x[2i+1], x[2i]) via two XLU lane rolls + one VPU select (no extra matmul).
            nxt = pltpu.roll(x, D - 1, axis=1)   # x[j+1] at position j  (roll by -1)
            prv = pltpu.roll(x, 1, axis=1)       # x[j-1] at position j
            return jnp.where(is_odd, prv, -nxt)

        def tile_heads(e):                       # (N, hd) -> (N, D); once per batch only
            return jnp.concatenate([e] * num_heads, axis=-1)

        xc = desc_full_ref[0]                                   # (N, D) compute dtype
        cos_f = tile_heads(enc_ref[0, 0])                       # (N, D) f32
        sin_f = tile_heads(enc_ref[0, 1])

        # one wide MXU pass over the whole sequence (fused Q/K/V projection)
        qkv = jnp.dot(xc, wqkv_ref[...],
                      preferred_element_type=jnp.float32) + bqkv_ref[...]
        q = qkv[:, 0:D]
        k = qkv[:, D:2 * D]
        v = qkv[:, 2 * D:3 * D]
        q = q * cos_f + rotate_half(q) * sin_f
        k = k * cos_f + rotate_half(k) * sin_f
        q_scr[...] = (q * inv_sqrt_hd).astype(cdt)              # pre-scaled queries
        k_scr[...] = k.T.astype(cdt)                            # cached transposed: (D, N)
        v_scr[...] = v.astype(cdt)

    # --- per query tile ---
    row0 = pl.multiple_of(qt * tq, tq)
    q_tile = q_scr[pl.ds(row0, tq), :]                          # (TQ, D) cdt
    x_res = desc_res_ref[0]                                     # (TQ, D) f32 (residual)
    xc_tile = x_res.astype(cdt)

    ctx_parts = []
    for h in range(num_heads):
        lo = h * head_dim
        qh = q_tile[:, lo:lo + head_dim]                        # (TQ, hd)
        kh = k_scr[lo:lo + head_dim, :]                         # (hd, N)  plain matmul RHS
        vh = v_scr[:, lo:lo + head_dim]                         # (N, hd)
        s = jnp.dot(qh, kh, preferred_element_type=jnp.float32)       # (TQ, N) f32
        m = jnp.max(s, axis=-1, keepdims=True)
        e = jnp.exp((s - m).astype(exp_dtype))                  # bf16 exp on v6e/v7x
        denom = jnp.sum(e.astype(jnp.float32), axis=-1, keepdims=True)
        inv = pl.reciprocal(denom, approx=approx_recip)         # (TQ, 1) f32
        # deferred softmax normalization: scale the (TQ, hd) context, not (TQ, N) probs.
        ctx_parts.append(jnp.dot(e.astype(cdt), vh,
                                 preferred_element_type=jnp.float32) * inv)
    context = jnp.concatenate(ctx_parts, axis=-1).astype(cdt)   # (TQ, D), head-major cols

    message = jnp.dot(context, wout_ref[...],
                      preferred_element_type=jnp.float32) + bout_ref[...]

    # FFN on cat([descriptor, message], -1); concat fused away via split W1
    h1 = (jnp.dot(xc_tile, w1a_ref[...], preferred_element_type=jnp.float32)
          + jnp.dot(message.astype(cdt), w1b_ref[...], preferred_element_type=jnp.float32)
          + b1_ref[...])

    # LayerNorm (biased variance, eps=1e-5) with affine, in f32
    mu = jnp.mean(h1, axis=-1, keepdims=True)
    var = jnp.mean((h1 - mu) ** 2, axis=-1, keepdims=True)
    hn = (h1 - mu) * jax.lax.rsqrt(var + 1e-5) * lng_ref[...] + lnb_ref[...]
    g = _gelu_exact(hn, approx_recip)

    out = x_res + jnp.dot(g.astype(cdt), w2_ref[...],
                          preferred_element_type=jnp.float32) + b2_ref[...]
    out_ref[0] = out.astype(out_ref.dtype)


# ---------------------------------------------------------------------------
# Wrapper: parameter plumbing (plain-JAX glue) + pallas_call.
# ---------------------------------------------------------------------------
def _bf16_transcendentals_ok():
    # v6e / v7x EUPs have a bf16 datapath; v5e (and older) do not -> keep the softmax
    # exponent in f32 there.
    try:
        kind = jax.devices()[0].device_kind.lower()
    except Exception:
        return False
    return not any(g in kind for g in ("v2", "v3", "v4", "v5"))


def self_block_pallas(descriptor, encoding, params, num_heads, *,
                      tq=None, compute_dtype=jnp.bfloat16):
    B, N, D = descriptor.shape
    assert D % num_heads == 0
    hd = D // num_heads
    assert hd % 2 == 0, "rotary embedding needs an even head_dim"

    if tq is None:
        tq = min(N, 256)
    assert N % tq == 0 and (tq == N or tq % 8 == 0), \
        "query tile must divide N (and be a multiple of 8)"
    nq = N // tq

    cdt = jnp.dtype(compute_dtype)
    f32 = jnp.float32
    is_f32 = cdt == jnp.dtype(jnp.float32)
    approx_recip = not is_f32                                   # keep the f32 path exact
    exp_dtype = cdt if (not is_f32 and _bf16_transcendentals_ok()) else jnp.dtype(f32)

    # PyTorch toqkv output channel c = h*hd*3 + d*3 + s  ->  kernel column s*D + h*hd + d
    perm = np.array([h * hd * 3 + d * 3 + s
                     for s in range(3) for h in range(num_heads) for d in range(hd)],
                    dtype=np.int32)
    wqkv_t = jnp.asarray(params["wqkv"], f32)[perm, :].T.astype(cdt)   # (D, 3D) head-major [q|k|v]
    bqkv_p = jnp.asarray(params["bqkv"], f32)[perm][None, :]           # (1, 3D) f32

    wout_t = jnp.asarray(params["wout"], f32).T.astype(cdt)            # (D, D)
    bout_p = jnp.asarray(params["bout"], f32)[None, :]
    w1_t = jnp.asarray(params["w1"], f32).T                            # (2D_in, 2D_out)
    w1a_t = w1_t[:D, :].astype(cdt)                                    # acts on descriptor
    w1b_t = w1_t[D:, :].astype(cdt)                                    # acts on message
    b1_p = jnp.asarray(params["b1"], f32)[None, :]
    lng_p = jnp.asarray(params["ln_g"], f32)[None, :]
    lnb_p = jnp.asarray(params["ln_b"], f32)[None, :]
    w2_t = jnp.asarray(params["w2"], f32).T.astype(cdt)                # (2D, D)
    b2_p = jnp.asarray(params["b2"], f32)[None, :]

    desc_f32 = descriptor.astype(f32)   # residual / FFN input, tile-blocked f32
    desc_c = descriptor.astype(cdt)     # QKV-projection input, full sequence, compute dtype
    # encoding: [2, B, 1, N, hd] -> (B, 2, N, hd); head replication happens in-kernel,
    # once per batch element at qt == 0 (no H x HBM-traffic inflation in the wrapper).
    enc = jnp.transpose(encoding[:, :, 0], (1, 0, 2, 3)).astype(f32)

    # Explicit VMEM budget: 2x margin over the estimated residency (clamped to [32,128] MiB).
    cb = cdt.itemsize
    weight_bytes = ((3 * D * D) + (D * D) + 2 * (D * 2 * D) + (2 * D * D)) * cb \
        + (3 * D + D + 4 * 2 * D + D) * 4
    est = (3 * N * D * cb            # Q / K^T / V scratch (single-buffered)
           + 2 * N * D * cb          # full-seq descriptor (double-buffered)
           + 2 * 2 * N * hd * 4      # rotary encoding (double-buffered)
           + 4 * tq * D * 4          # residual-in + out tiles (double-buffered)
           + 2 * weight_bytes        # resident weights (double-buffered)
           + 2 * N * 3 * D * 4)      # qt==0 transient qkv (f32) + spill headroom
    vmem_limit = int(min(max(2 * est, 32 << 20), 128 << 20))

    kernel = functools.partial(
        self_block_kernel, num_heads=num_heads, head_dim=hd, tq=tq,
        compute_dtype=cdt, exp_dtype=exp_dtype, approx_recip=approx_recip)

    return pl.pallas_call(
        kernel,
        out_shape=jax.ShapeDtypeStruct((B, N, D), descriptor.dtype),
        grid=(B, nq),
        in_specs=[
            pl.BlockSpec((1, tq, D), lambda b, q: (b, q, 0)),        # residual tile (f32)
            pl.BlockSpec((1, N, D), lambda b, q: (b, 0, 0)),         # full-seq descriptor (cdt)
            pl.BlockSpec((1, 2, N, hd), lambda b, q: (b, 0, 0, 0)),  # rotary cos/sin, hd wide
            pl.BlockSpec((D, 3 * D), lambda b, q: (0, 0)),           # Wqkv^T (permuted)
            pl.BlockSpec((1, 3 * D), lambda b, q: (0, 0)),           # bqkv
            pl.BlockSpec((D, D), lambda b, q: (0, 0)),               # Wout^T
            pl.BlockSpec((1, D), lambda b, q: (0, 0)),               # bout
            pl.BlockSpec((D, 2 * D), lambda b, q: (0, 0)),           # W1a^T (descriptor half)
            pl.BlockSpec((D, 2 * D), lambda b, q: (0, 0)),           # W1b^T (message half)
            pl.BlockSpec((1, 2 * D), lambda b, q: (0, 0)),           # b1
            pl.BlockSpec((1, 2 * D), lambda b, q: (0, 0)),           # LN gamma
            pl.BlockSpec((1, 2 * D), lambda b, q: (0, 0)),           # LN beta
            pl.BlockSpec((2 * D, D), lambda b, q: (0, 0)),           # W2^T
            pl.BlockSpec((1, D), lambda b, q: (0, 0)),               # b2
        ],
        out_specs=pl.BlockSpec((1, tq, D), lambda b, q: (b, q, 0)),
        scratch_shapes=[
            pltpu.VMEM((N, D), cdt),   # Q   (rotary + 1/sqrt(hd) applied), full sequence
            pltpu.VMEM((D, N), cdt),   # K^T (rotary applied), full sequence, transposed
            pltpu.VMEM((N, D), cdt),   # V, full sequence
        ],
        # Q/K^T/V scratch is filled at qt == 0 and reused by the remaining query tiles of
        # the same batch element -> the query-tile axis MUST stay sequential ("arbitrary")
        # and minormost; only the batch axis is megacore-parallel.
        compiler_params=pltpu.CompilerParams(
            dimension_semantics=("parallel", "arbitrary"),
            vmem_limit_bytes=vmem_limit),
    )(desc_f32, desc_c, enc, wqkv_t, bqkv_p, wout_t, bout_p,
      w1a_t, w1b_t, b1_p, lng_p, lnb_p, w2_t, b2_p)


# ---------------------------------------------------------------------------
# Pure-JAX reference that mirrors the PyTorch forward exactly.
# ---------------------------------------------------------------------------
def self_block_reference(descriptor, encoding, p, num_heads):
    B, N, D = descriptor.shape
    hd = D // num_heads
    qkv = descriptor @ p["wqkv"].T + p["bqkv"]
    qkv = qkv.reshape(B, N, num_heads, hd, 3)
    qkv = jnp.transpose(qkv, (0, 2, 1, 3, 4))                 # [B, H, N, hd, 3]
    q, k, v = qkv[..., 0], qkv[..., 1], qkv[..., 2]

    def rot_half(x):
        xr = x.reshape(x.shape[:-1] + (hd // 2, 2))
        x1, x2 = xr[..., 0], xr[..., 1]
        return jnp.stack((-x2, x1), axis=-1).reshape(x.shape)

    q = q * encoding[0] + rot_half(q) * encoding[1]
    k = k * encoding[0] + rot_half(k) * encoding[1]

    s = jnp.einsum("bhqd,bhkd->bhqk", q, k) / math.sqrt(hd)
    ctx = jnp.einsum("bhqk,bhkd->bhqd", jax.nn.softmax(s, axis=-1), v)
    ctx = jnp.transpose(ctx, (0, 2, 1, 3)).reshape(B, N, D)
    message = ctx @ p["wout"].T + p["bout"]

    z = jnp.concatenate([descriptor, message], axis=-1)
    h1 = z @ p["w1"].T + p["b1"]
    mu = h1.mean(-1, keepdims=True)
    var = ((h1 - mu) ** 2).mean(-1, keepdims=True)
    hn = (h1 - mu) / jnp.sqrt(var + 1e-5) * p["ln_g"] + p["ln_b"]
    g = jax.nn.gelu(hn, approximate=False)
    return descriptor + g @ p["w2"].T + p["b2"]


if __name__ == "__main__":
    # Lane-dense embed dim (multiple of 128) and two query tiles so the
    # (batch, query_tile) grid + Q/K^T/V caching path is exercised.
    B, N, D, H = 2, 16, 128, 4
    hd = D // H

    key = jax.random.PRNGKey(0)
    ks = jax.random.split(key, 12)

    def lin_init(kw, kb, out_dim, in_dim):
        bound = 1.0 / math.sqrt(in_dim)
        w = jax.random.uniform(kw, (out_dim, in_dim), jnp.float32, -bound, bound)
        b = jax.random.uniform(kb, (out_dim,), jnp.float32, -bound, bound)
        return w, b

    wqkv, bqkv = lin_init(ks[0], ks[1], 3 * D, D)
    wout, bout = lin_init(ks[2], ks[3], D, D)
    w1, b1 = lin_init(ks[4], ks[5], 2 * D, 2 * D)
    w2, b2 = lin_init(ks[6], ks[7], D, 2 * D)
    ln_g = 1.0 + 0.1 * jax.random.normal(ks[8], (2 * D,), jnp.float32)
    ln_b = 0.1 * jax.random.normal(ks[9], (2 * D,), jnp.float32)

    params = dict(wqkv=wqkv, bqkv=bqkv, wout=wout, bout=bout,
                  w1=w1, b1=b1, ln_g=ln_g, ln_b=ln_b, w2=w2, b2=b2)

    descriptor = jax.random.normal(ks[10], (B, N, D), jnp.float32)
    theta = jax.random.uniform(ks[11], (B, 1, N, hd), jnp.float32, 0.0, 2.0 * math.pi)
    encoding = jnp.stack([jnp.cos(theta), jnp.sin(theta)], axis=0)   # [2, B, 1, N, hd]

    ref = jax.block_until_ready(self_block_reference(descriptor, encoding, params, H))

    # f32 compute path: tight correctness check (exact reciprocals, f32 exp).
    out_f32 = jax.block_until_ready(
        self_block_pallas(descriptor, encoding, params, H, tq=8, compute_dtype=jnp.float32))
    err_f32 = float(jnp.max(jnp.abs(out_f32 - ref)))
    assert err_f32 < 1e-2, f"f32 mismatch vs reference: max abs err {err_f32}"

    # bf16 compute path (default / fast): loose sanity bound for the quantized
    # matmul operands + bf16 softmax exponent + approx reciprocals.
    out_bf16 = jax.block_until_ready(
        self_block_pallas(descriptor, encoding, params, H, tq=8))
    err_bf16 = float(jnp.max(jnp.abs(out_bf16 - ref)))
    assert err_bf16 < 2e-1, f"bf16 mismatch vs reference: max abs err {err_bf16}"

    print("KERNEL_OK")
</pallas_src>

<mosaic_0001>
module attributes {stable_mosaic.version = 11 : i64} {
  func.func @self_block_kernel(%arg0: i32, %arg1: i32, %arg2: memref<1x8x128xf32, #tpu.memory_space<vmem>>, %arg3: memref<1x16x128xf32, #tpu.memory_space<vmem>>, %arg4: memref<1x2x16x32xf32, #tpu.memory_space<vmem>>, %arg5: memref<128x384xf32, #tpu.memory_space<vmem>>, %arg6: memref<1x384xf32, #tpu.memory_space<vmem>>, %arg7: memref<128x128xf32, #tpu.memory_space<vmem>>, %arg8: memref<1x128xf32, #tpu.memory_space<vmem>>, %arg9: memref<128x256xf32, #tpu.memory_space<vmem>>, %arg10: memref<128x256xf32, #tpu.memory_space<vmem>>, %arg11: memref<1x256xf32, #tpu.memory_space<vmem>>, %arg12: memref<1x256xf32, #tpu.memory_space<vmem>>, %arg13: memref<1x256xf32, #tpu.memory_space<vmem>>, %arg14: memref<256x128xf32, #tpu.memory_space<vmem>>, %arg15: memref<1x128xf32, #tpu.memory_space<vmem>>, %arg16: memref<1x8x128xf32, #tpu.memory_space<vmem>>, %arg17: memref<16x128xf32, #tpu.memory_space<vmem>>, %arg18: memref<128x16xf32, #tpu.memory_space<vmem>>, %arg19: memref<16x128xf32, #tpu.memory_space<vmem>>) attributes {dimension_semantics = [#tpu.dimension_semantics<parallel>, #tpu.dimension_semantics<arbitrary>], iteration_bounds = array<i64: 2, 2>, scalar_prefetch = 0 : i64, scratch_operands = 3 : i64, tpu.core_type = #tpu.core_type<tc>, window_params = [{transform_indices = @transform_0, window_bounds = array<i64: 1, 8, 128>}, {transform_indices = @transform_1, window_bounds = array<i64: 1, 16, 128>}, {transform_indices = @transform_2, window_bounds = array<i64: 1, 2, 16, 32>}, {pipeline_mode = #tpu.pipeline_mode<synchronous>, transform_indices = @transform_3, window_bounds = array<i64: 128, 384>}, {pipeline_mode = #tpu.pipeline_mode<synchronous>, transform_indices = @transform_4, window_bounds = array<i64: 1, 384>}, {pipeline_mode = #tpu.pipeline_mode<synchronous>, transform_indices = @transform_5, window_bounds = array<i64: 128, 128>}, {pipeline_mode = #tpu.pipeline_mode<synchronous>, transform_indices = @transform_6, window_bounds = array<i64: 1, 128>}, {pipeline_mode = #tpu.pipeline_mode<synchronous>, transform_indices = @transform_7, window_bounds = array<i64: 128, 256>}, {pipeline_mode = #tpu.pipeline_mode<synchronous>, transform_indices = @transform_8, window_bounds = array<i64: 128, 256>}, {pipeline_mode = #tpu.pipeline_mode<synchronous>, transform_indices = @transform_9, window_bounds = array<i64: 1, 256>}, {pipeline_mode = #tpu.pipeline_mode<synchronous>, transform_indices = @transform_10, window_bounds = array<i64: 1, 256>}, {pipeline_mode = #tpu.pipeline_mode<synchronous>, transform_indices = @transform_11, window_bounds = array<i64: 1, 256>}, {pipeline_mode = #tpu.pipeline_mode<synchronous>, transform_indices = @transform_12, window_bounds = array<i64: 256, 128>}, {pipeline_mode = #tpu.pipeline_mode<synchronous>, transform_indices = @transform_13, window_bounds = array<i64: 1, 128>}, {transform_indices = @transform_14, window_bounds = array<i64: 1, 8, 128>}]} {
    %c0_i32 = arith.constant 0 : i32
    %0 = arith.cmpi eq, %arg1, %c0_i32 : i32
    %1 = arith.extui %0 : i1 to i32
    %c0_i32_0 = arith.constant 0 : i32
    %2 = arith.cmpi ne, %1, %c0_i32_0 : i32
    scf.if %2 {
      %156 = tpu.iota {dimensions = array<i32: 1>} : vector<1x128xi32>
      %c1_i32 = arith.constant 1 : i32
      %157 = vector.broadcast %c1_i32 : i32 to vector<1x128xi32>
      %158 = arith.andi %156, %157 : vector<1x128xi32>
      %c1_i32_77 = arith.constant 1 : i32
      %159 = vector.broadcast %c1_i32_77 : i32 to vector<1x128xi32>
      %160 = arith.cmpi eq, %158, %159 : vector<1x128xi32>
      %c0_78 = arith.constant 0 : index
      %c0_79 = arith.constant 0 : index
      %c0_80 = arith.constant 0 : index
      %161 = vector.load %arg3[%c0_78, %c0_79, %c0_80] : memref<1x16x128xf32, #tpu.memory_space<vmem>>, vector<1x16x128xf32>
      %162 = vector.shape_cast %161 : vector<1x16x128xf32> to vector<16x128xf32>
      %c0_81 = arith.constant 0 : index
      %c0_82 = arith.constant 0 : index
      %c0_83 = arith.constant 0 : index
      %c0_84 = arith.constant 0 : index
      %163 = vector.load %arg4[%c0_81, %c0_82, %c0_83, %c0_84] : memref<1x2x16x32xf32, #tpu.memory_space<vmem>>, vector<1x1x16x32xf32>
      %164 = vector.shape_cast %163 : vector<1x1x16x32xf32> to vector<16x32xf32>
      %165 = tpu.concatenate %164, %164, %164, %164 in 1 : vector<16x32xf32>, vector<16x32xf32>, vector<16x32xf32>, vector<16x32xf32> -> vector<16x128xf32>
      %c0_85 = arith.constant 0 : index
      %c1 = arith.constant 1 : index
      %c0_86 = arith.constant 0 : index
      %c0_87 = arith.constant 0 : index
      %166 = vector.load %arg4[%c0_85, %c1, %c0_86, %c0_87] : memref<1x2x16x32xf32, #tpu.memory_space<vmem>>, vector<1x1x16x32xf32>
      %167 = vector.shape_cast %166 : vector<1x1x16x32xf32> to vector<16x32xf32>
      %168 = tpu.concatenate %167, %167, %167, %167 in 1 : vector<16x32xf32>, vector<16x32xf32>, vector<16x32xf32>, vector<16x32xf32> -> vector<16x128xf32>
      %c0_88 = arith.constant 0 : index
      %c0_89 = arith.constant 0 : index
      %169 = vector.load %arg5[%c0_88, %c0_89] : memref<128x384xf32, #tpu.memory_space<vmem>>, vector<128x384xf32>
      %cst_90 = arith.constant dense<0.000000e+00> : vector<16x384xf32>
      %170 = tpu.matmul %162, %169, %cst_90 {dimension_numbers = #tpu.dot_dimension_numbers<[1], [0], [0], [1], [0, 0, 1, 1], [], []>} : vector<16x128xf32>, vector<128x384xf32>, vector<16x384xf32> -> vector<16x384xf32>
      %c0_91 = arith.constant 0 : index
      %c0_92 = arith.constant 0 : index
      %171 = vector.load %arg6[%c0_91, %c0_92] : memref<1x384xf32, #tpu.memory_space<vmem>>, vector<1x384xf32>
      %172 = vector.broadcast %171 : vector<1x384xf32> to vector<16x384xf32>
      %173 = arith.addf %170, %172 : vector<16x384xf32>
      %174 = vector.extract_strided_slice %173 {offsets = [0, 0], sizes = [16, 128], strides = [1, 1]} : vector<16x384xf32> to vector<16x128xf32>
      %175 = vector.extract_strided_slice %173 {offsets = [0, 128], sizes = [16, 128], strides = [1, 1]} : vector<16x384xf32> to vector<16x128xf32>
      %176 = vector.extract_strided_slice %173 {offsets = [0, 256], sizes = [16, 128], strides = [1, 1]} : vector<16x384xf32> to vector<16x128xf32>
      %177 = arith.mulf %174, %165 : vector<16x128xf32>
      %c127_i32 = arith.constant 127 : i32
      %178 = tpu.dynamic_rotate %174 by %c127_i32 dim 1 : vector<16x128xf32>, i32 -> vector<16x128xf32>
      %c1_i32_93 = arith.constant 1 : i32
      %179 = tpu.dynamic_rotate %174 by %c1_i32_93 dim 1 : vector<16x128xf32>, i32 -> vector<16x128xf32>
      %cst_94 = arith.constant 0.000000e+00 : f32
      %180 = vector.broadcast %cst_94 : f32 to vector<16x128xf32>
      %181 = arith.subf %180, %178 : vector<16x128xf32>
      %182 = vector.shape_cast %160 : vector<1x128xi1> to vector<1x128xi1>
      %183 = vector.broadcast %182 : vector<1x128xi1> to vector<16x128xi1>
      %184 = arith.select %183, %179, %181 : vector<16x128xi1>, vector<16x128xf32>
      %185 = arith.mulf %184, %168 : vector<16x128xf32>
      %186 = arith.addf %177, %185 : vector<16x128xf32>
      %187 = arith.mulf %175, %165 : vector<16x128xf32>
      %c127_i32_95 = arith.constant 127 : i32
      %188 = tpu.dynamic_rotate %175 by %c127_i32_95 dim 1 : vector<16x128xf32>, i32 -> vector<16x128xf32>
      %c1_i32_96 = arith.constant 1 : i32
      %189 = tpu.dynamic_rotate %175 by %c1_i32_96 dim 1 : vector<16x128xf32>, i32 -> vector<16x128xf32>
      %cst_97 = arith.constant 0.000000e+00 : f32
      %190 = vector.broadcast %cst_97 : f32 to vector<16x128xf32>
      %191 = arith.subf %190, %188 : vector<16x128xf32>
      %192 = vector.shape_cast %160 : vector<1x128xi1> to vector<1x128xi1>
      %193 = vector.broadcast %192 : vector<1x128xi1> to vector<16x128xi1>
      %194 = arith.select %193, %189, %191 : vector<16x128xi1>, vector<16x128xf32>
      %195 = arith.mulf %194, %168 : vector<16x128xf32>
      %196 = arith.addf %187, %195 : vector<16x128xf32>
      %cst_98 = arith.constant 0.176776692 : f32
      %197 = vector.broadcast %cst_98 : f32 to vector<16x128xf32>
      %198 = arith.mulf %186, %197 : vector<16x128xf32>
      %c0_99 = arith.constant 0 : index
      %c0_100 = arith.constant 0 : index
      %199 = vector.load %arg17[%c0_99, %c0_100] : memref<16x128xf32, #tpu.memory_space<vmem>>, vector<16x128xf32>
      tpu.vector_store %arg17[%c0_99, %c0_100], %198 {strides = array<i32>} : memref<16x128xf32, #tpu.memory_space<vmem>>, vector<16x128xf32>,
      %200 = tpu.transpose %196, [1, 0] : vector<16x128xf32> -> vector<128x16xf32>
      %c0_101 = arith.constant 0 : index
      %c0_102 = arith.constant 0 : index
      %201 = vector.load %arg18[%c0_101, %c0_102] : memref<128x16xf32, #tpu.memory_space<vmem>>, vector<128x16xf32>
      tpu.vector_store %arg18[%c0_101, %c0_102], %200 {strides = array<i32>} : memref<128x16xf32, #tpu.memory_space<vmem>>, vector<128x16xf32>,
      %c0_103 = arith.constant 0 : index
      %c0_104 = arith.constant 0 : index
      %202 = vector.load %arg19[%c0_103, %c0_104] : memref<16x128xf32, #tpu.memory_space<vmem>>, vector<16x128xf32>
      tpu.vector_store %arg19[%c0_103, %c0_104], %176 {strides = array<i32>} : memref<16x128xf32, #tpu.memory_space<vmem>>, vector<16x128xf32>,
    } else {
    }
    %c8_i32 = arith.constant 8 : i32
    %3 = arith.muli %arg1, %c8_i32 : i32
    %4 = tpu.assume_multiple %3, 8 : i32
    %5 = arith.index_cast %4 : i32 to index
    %c0 = arith.constant 0 : index
    %6 = vector.load %arg17[%5, %c0] : memref<16x128xf32, #tpu.memory_space<vmem>>, vector<8x128xf32>
    %c0_1 = arith.constant 0 : index
    %c0_2 = arith.constant 0 : index
    %c0_3 = arith.constant 0 : index
    %7 = vector.load %arg2[%c0_1, %c0_2, %c0_3] : memref<1x8x128xf32, #tpu.memory_space<vmem>>, vector<1x8x128xf32>
    %8 = vector.shape_cast %7 : vector<1x8x128xf32> to vector<8x128xf32>
    %9 = vector.extract_strided_slice %6 {offsets = [0, 0], sizes = [8, 32], strides = [1, 1]} : vector<8x128xf32> to vector<8x32xf32>
    %c0_4 = arith.constant 0 : index
    %c0_5 = arith.constant 0 : index
    %10 = vector.load %arg18[%c0_4, %c0_5] : memref<128x16xf32, #tpu.memory_space<vmem>>, vector<32x16xf32>
    %c0_6 = arith.constant 0 : index
    %c0_7 = arith.constant 0 : index
    %11 = vector.load %arg19[%c0_6, %c0_7] : memref<16x128xf32, #tpu.memory_space<vmem>>, vector<16x32xf32>
    %cst = arith.constant dense<0.000000e+00> : vector<8x16xf32>
    %12 = tpu.matmul %9, %10, %cst {dimension_numbers = #tpu.dot_dimension_numbers<[1], [0], [0], [1], [0, 0, 1, 1], [], []>} : vector<8x32xf32>, vector<32x16xf32>, vector<8x16xf32> -> vector<8x16xf32>
    %cst_8 = arith.constant dense<0xFF800000> : vector<8xf32>
    %13 = vector.multi_reduction <maximumf>, %12, %cst_8 [1] : vector<8x16xf32> to vector<8xf32>
    %14 = vector.shape_cast %13 : vector<8xf32> to vector<8x1xf32>
    %15 = vector.broadcast %14 : vector<8x1xf32> to vector<8x16xf32>
    %16 = arith.subf %12, %15 : vector<8x16xf32>
    %17 = math.exp %16 : vector<8x16xf32>
    %cst_9 = arith.constant dense<0.000000e+00> : vector<8xf32>
    %18 = vector.multi_reduction <add>, %17, %cst_9 [1] : vector<8x16xf32> to vector<8xf32>
    %19 = vector.shape_cast %18 : vector<8xf32> to vector<8x1xf32>
    %20 = tpu.reciprocal %19 : vector<8x1xf32> -> vector<8x1xf32>
    %cst_10 = arith.constant dense<0.000000e+00> : vector<8x32xf32>
    %21 = tpu.matmul %17, %11, %cst_10 {dimension_numbers = #tpu.dot_dimension_numbers<[1], [0], [0], [1], [0, 0, 1, 1], [], []>} : vector<8x16xf32>, vector<16x32xf32>, vector<8x32xf32> -> vector<8x32xf32>
    %22 = vector.broadcast %20 : vector<8x1xf32> to vector<8x32xf32>
    %23 = arith.mulf %21, %22 : vector<8x32xf32>
    %24 = vector.extract_strided_slice %6 {offsets = [0, 32], sizes = [8, 32], strides = [1, 1]} : vector<8x128xf32> to vector<8x32xf32>
    %c32 = arith.constant 32 : index
    %c0_11 = arith.constant 0 : index
    %25 = vector.load %arg18[%c32, %c0_11] : memref<128x16xf32, #tpu.memory_space<vmem>>, vector<32x16xf32>
    %c0_12 = arith.constant 0 : index
    %c32_13 = arith.constant 32 : index
    %26 = vector.load %arg19[%c0_12, %c32_13] : memref<16x128xf32, #tpu.memory_space<vmem>>, vector<16x32xf32>
    %cst_14 = arith.constant dense<0.000000e+00> : vector<8x16xf32>
    %27 = tpu.matmul %24, %25, %cst_14 {dimension_numbers = #tpu.dot_dimension_numbers<[1], [0], [0], [1], [0, 0, 1, 1], [], []>} : vector<8x32xf32>, vector<32x16xf32>, vector<8x16xf32> -> vector<8x16xf32>
    %cst_15 = arith.constant dense<0xFF800000> : vector<8xf32>
    %28 = vector.multi_reduction <maximumf>, %27, %cst_15 [1] : vector<8x16xf32> to vector<8xf32>
    %29 = vector.shape_cast %28 : vector<8xf32> to vector<8x1xf32>
    %30 = vector.broadcast %29 : vector<8x1xf32> to vector<8x16xf32>
    %31 = arith.subf %27, %30 : vector<8x16xf32>
    %32 = math.exp %31 : vector<8x16xf32>
    %cst_16 = arith.constant dense<0.000000e+00> : vector<8xf32>
    %33 = vector.multi_reduction <add>, %32, %cst_16 [1] : vector<8x16xf32> to vector<8xf32>
    %34 = vector.shape_cast %33 : vector<8xf32> to vector<8x1xf32>
    %35 = tpu.reciprocal %34 : vector<8x1xf32> -> vector<8x1xf32>
    %cst_17 = arith.constant dense<0.000000e+00> : vector<8x32xf32>
    %36 = tpu.matmul %32, %26, %cst_17 {dimension_numbers = #tpu.dot_dimension_numbers<[1], [0], [0], [1], [0, 0, 1, 1], [], []>} : vector<8x16xf32>, vector<16x32xf32>, vector<8x32xf32> -> vector<8x32xf32>
    %37 = vector.broadcast %35 : vector<8x1xf32> to vector<8x32xf32>
    %38 = arith.mulf %36, %37 : vector<8x32xf32>
    %39 = vector.extract_strided_slice %6 {offsets = [0, 64], sizes = [8, 32], strides = [1, 1]} : vector<8x128xf32> to vector<8x32xf32>
    %c64 = arith.constant 64 : index
    %c0_18 = arith.constant 0 : index
    %40 = vector.load %arg18[%c64, %c0_18] : memref<128x16xf32, #tpu.memory_space<vmem>>, vector<32x16xf32>
    %c0_19 = arith.constant 0 : index
    %c64_20 = arith.constant 64 : index
    %41 = vector.load %arg19[%c0_19, %c64_20] : memref<16x128xf32, #tpu.memory_space<vmem>>, vector<16x32xf32>
    %cst_21 = arith.constant dense<0.000000e+00> : vector<8x16xf32>
    %42 = tpu.matmul %39, %40, %cst_21 {dimension_numbers = #tpu.dot_dimension_numbers<[1], [0], [0], [1], [0, 0, 1, 1], [], []>} : vector<8x32xf32>, vector<32x16xf32>, vector<8x16xf32> -> vector<8x16xf32>
    %cst_22 = arith.constant dense<0xFF800000> : vector<8xf32>
    %43 = vector.multi_reduction <maximumf>, %42, %cst_22 [1] : vector<8x16xf32> to vector<8xf32>
    %44 = vector.shape_cast %43 : vector<8xf32> to vector<8x1xf32>
    %45 = vector.broadcast %44 : vector<8x1xf32> to vector<8x16xf32>
    %46 = arith.subf %42, %45 : vector<8x16xf32>
    %47 = math.exp %46 : vector<8x16xf32>
    %cst_23 = arith.constant dense<0.000000e+00> : vector<8xf32>
    %48 = vector.multi_reduction <add>, %47, %cst_23 [1] : vector<8x16xf32> to vector<8xf32>
    %49 = vector.shape_cast %48 : vector<8xf32> to vector<8x1xf32>
    %50 = tpu.reciprocal %49 : vector<8x1xf32> -> vector<8x1xf32>
    %cst_24 = arith.constant dense<0.000000e+00> : vector<8x32xf32>
    %51 = tpu.matmul %47, %41, %cst_24 {dimension_numbers = #tpu.dot_dimension_numbers<[1], [0], [0], [1], [0, 0, 1, 1], [], []>} : vector<8x16xf32>, vector<16x32xf32>, vector<8x32xf32> -> vector<8x32xf32>
    %52 = vector.broadcast %50 : vector<8x1xf32> to vector<8x32xf32>
    %53 = arith.mulf %51, %52 : vector<8x32xf32>
    %54 = vector.extract_strided_slice %6 {offsets = [0, 96], sizes = [8, 32], strides = [1, 1]} : vector<8x128xf32> to vector<8x32xf32>
    %c96 = arith.constant 96 : index
    %c0_25 = arith.constant 0 : index
    %55 = vector.load %arg18[%c96, %c0_25] : memref<128x16xf32, #tpu.memory_space<vmem>>, vector<32x16xf32>
    %c0_26 = arith.constant 0 : index
    %c96_27 = arith.constant 96 : index
    %56 = vector.load %arg19[%c0_26, %c96_27] : memref<16x128xf32, #tpu.memory_space<vmem>>, vector<16x32xf32>
    %cst_28 = arith.constant dense<0.000000e+00> : vector<8x16xf32>
    %57 = tpu.matmul %54, %55, %cst_28 {dimension_numbers = #tpu.dot_dimension_numbers<[1], [0], [0], [1], [0, 0, 1, 1], [], []>} : vector<8x32xf32>, vector<32x16xf32>, vector<8x16xf32> -> vector<8x16xf32>
    %cst_29 = arith.constant dense<0xFF800000> : vector<8xf32>
    %58 = vector.multi_reduction <maximumf>, %57, %cst_29 [1] : vector<8x16xf32> to vector<8xf32>
    %59 = vector.shape_cast %58 : vector<8xf32> to vector<8x1xf32>
    %60 = vector.broadcast %59 : vector<8x1xf32> to vector<8x16xf32>
    %61 = arith.subf %57, %60 : vector<8x16xf32>
    %62 = math.exp %61 : vector<8x16xf32>
    %cst_30 = arith.constant dense<0.000000e+00> : vector<8xf32>
    %63 = vector.multi_reduction <add>, %62, %cst_30 [1] : vector<8x16xf32> to vector<8xf32>
    %64 = vector.shape_cast %63 : vector<8xf32> to vector<8x1xf32>
    %65 = tpu.reciprocal %64 : vector<8x1xf32> -> vector<8x1xf32>
    %cst_31 = arith.constant dense<0.000000e+00> : vector<8x32xf32>
    %66 = tpu.matmul %62, %56, %cst_31 {dimension_numbers = #tpu.dot_dimension_numbers<[1], [0], [0], [1], [0, 0, 1, 1], [], []>} : vector<8x16xf32>, vector<16x32xf32>, vector<8x32xf32> -> vector<8x32xf32>
    %67 = vector.broadcast %65 : vector<8x1xf32> to vector<8x32xf32>
    %68 = arith.mulf %66, %67 : vector<8x32xf32>
    %69 = tpu.concatenate %23, %38, %53, %68 in 1 : vector<8x32xf32>, vector<8x32xf32>, vector<8x32xf32>, vector<8x32xf32> -> vector<8x128xf32>
    %c0_32 = arith.constant 0 : index
    %c0_33 = arith.constant 0 : index
    %70 = vector.load %arg7[%c0_32, %c0_33] : memref<128x128xf32, #tpu.memory_space<vmem>>, vector<128x128xf32>
    %cst_34 = arith.constant dense<0.000000e+00> : vector<8x128xf32>
    %71 = tpu.matmul %69, %70, %cst_34 {dimension_numbers = #tpu.dot_dimension_numbers<[1], [0], [0], [1], [0, 0, 1, 1], [], []>} : vector<8x128xf32>, vector<128x128xf32>, vector<8x128xf32> -> vector<8x128xf32>
    %c0_35 = arith.constant 0 : index
    %c0_36 = arith.constant 0 : index
    %72 = vector.load %arg8[%c0_35, %c0_36] : memref<1x128xf32, #tpu.memory_space<vmem>>, vector<1x128xf32>
    %73 = vector.broadcast %72 : vector<1x128xf32> to vector<8x128xf32>
    %74 = arith.addf %71, %73 : vector<8x128xf32>
    %c0_37 = arith.constant 0 : index
    %c0_38 = arith.constant 0 : index
    %75 = vector.load %arg9[%c0_37, %c0_38] : memref<128x256xf32, #tpu.memory_space<vmem>>, vector<128x256xf32>
    %cst_39 = arith.constant dense<0.000000e+00> : vector<8x256xf32>
    %76 = tpu.matmul %8, %75, %cst_39 {dimension_numbers = #tpu.dot_dimension_numbers<[1], [0], [0], [1], [0, 0, 1, 1], [], []>} : vector<8x128xf32>, vector<128x256xf32>, vector<8x256xf32> -> vector<8x256xf32>
    %c0_40 = arith.constant 0 : index
    %c0_41 = arith.constant 0 : index
    %77 = vector.load %arg10[%c0_40, %c0_41] : memref<128x256xf32, #tpu.memory_space<vmem>>, vector<128x256xf32>
    %cst_42 = arith.constant dense<0.000000e+00> : vector<8x256xf32>
    %78 = tpu.matmul %74, %77, %cst_42 {dimension_numbers = #tpu.dot_dimension_numbers<[1], [0], [0], [1], [0, 0, 1, 1], [], []>} : vector<8x128xf32>, vector<128x256xf32>, vector<8x256xf32> -> vector<8x256xf32>
    %79 = arith.addf %76, %78 : vector<8x256xf32>
    %c0_43 = arith.constant 0 : index
    %c0_44 = arith.constant 0 : index
    %80 = vector.load %arg11[%c0_43, %c0_44] : memref<1x256xf32, #tpu.memory_space<vmem>>, vector<1x256xf32>
    %81 = vector.broadcast %80 : vector<1x256xf32> to vector<8x256xf32>
    %82 = arith.addf %79, %81 : vector<8x256xf32>
    %cst_45 = arith.constant dense<0.000000e+00> : vector<8xf32>
    %83 = vector.multi_reduction <add>, %82, %cst_45 [1] : vector<8x256xf32> to vector<8xf32>
    %84 = vector.shape_cast %83 : vector<8xf32> to vector<8x1xf32>
    %cst_46 = arith.constant 2.560000e+02 : f32
    %85 = vector.broadcast %cst_46 : f32 to vector<8x1xf32>
    %86 = arith.divf %84, %85 : vector<8x1xf32>
    %87 = vector.broadcast %86 : vector<8x1xf32> to vector<8x256xf32>
    %88 = arith.subf %82, %87 : vector<8x256xf32>
    %89 = arith.mulf %88, %88 : vector<8x256xf32>
    %cst_47 = arith.constant dense<0.000000e+00> : vector<8xf32>
    %90 = vector.multi_reduction <add>, %89, %cst_47 [1] : vector<8x256xf32> to vector<8xf32>
    %91 = vector.shape_cast %90 : vector<8xf32> to vector<8x1xf32>
    %cst_48 = arith.constant 2.560000e+02 : f32
    %92 = vector.broadcast %cst_48 : f32 to vector<8x1xf32>
    %93 = arith.divf %91, %92 : vector<8x1xf32>
    %94 = vector.broadcast %86 : vector<8x1xf32> to vector<8x256xf32>
    %95 = arith.subf %82, %94 : vector<8x256xf32>
    %cst_49 = arith.constant 9.99999974E-6 : f32
    %96 = vector.broadcast %cst_49 : f32 to vector<8x1xf32>
    %97 = arith.addf %93, %96 : vector<8x1xf32>
    %98 = math.rsqrt %97 : vector<8x1xf32>
    %99 = vector.broadcast %98 : vector<8x1xf32> to vector<8x256xf32>
    %100 = arith.mulf %95, %99 : vector<8x256xf32>
    %c0_50 = arith.constant 0 : index
    %c0_51 = arith.constant 0 : index
    %101 = vector.load %arg12[%c0_50, %c0_51] : memref<1x256xf32, #tpu.memory_space<vmem>>, vector<1x256xf32>
    %102 = vector.broadcast %101 : vector<1x256xf32> to vector<8x256xf32>
    %103 = arith.mulf %100, %102 : vector<8x256xf32>
    %c0_52 = arith.constant 0 : index
    %c0_53 = arith.constant 0 : index
    %104 = vector.load %arg13[%c0_52, %c0_53] : memref<1x256xf32, #tpu.memory_space<vmem>>, vector<1x256xf32>
    %105 = vector.broadcast %104 : vector<1x256xf32> to vector<8x256xf32>
    %106 = arith.addf %103, %105 : vector<8x256xf32>
    %cst_54 = arith.constant 5.000000e-01 : f32
    %107 = vector.broadcast %cst_54 : f32 to vector<8x256xf32>
    %108 = arith.mulf %107, %106 : vector<8x256xf32>
    %cst_55 = arith.constant 0.707106769 : f32
    %109 = vector.broadcast %cst_55 : f32 to vector<8x256xf32>
    %110 = arith.mulf %106, %109 : vector<8x256xf32>
    %cst_56 = arith.constant 0.000000e+00 : f32
    %111 = vector.broadcast %cst_56 : f32 to vector<8x256xf32>
    %112 = arith.cmpf oge, %110, %111 : vector<8x256xf32>
    %cst_57 = arith.constant 1.000000e+00 : f32
    %cst_58 = arith.constant -1.000000e+00 : f32
    %113 = vector.broadcast %cst_57 : f32 to vector<8x256xf32>
    %114 = vector.broadcast %cst_58 : f32 to vector<8x256xf32>
    %115 = arith.select %112, %113, %114 : vector<8x256xi1>, vector<8x256xf32>
    %116 = math.absf %110 : vector<8x256xf32>
    %cst_59 = arith.constant 0.327591091 : f32
    %117 = vector.broadcast %cst_59 : f32 to vector<8x256xf32>
    %118 = arith.mulf %117, %116 : vector<8x256xf32>
    %cst_60 = arith.constant 1.000000e+00 : f32
    %119 = vector.broadcast %cst_60 : f32 to vector<8x256xf32>
    %120 = arith.addf %119, %118 : vector<8x256xf32>
    %121 = tpu.reciprocal %120 : vector<8x256xf32> -> vector<8x256xf32>
    %cst_61 = arith.constant 1.06140542 : f32
    %122 = vector.broadcast %cst_61 : f32 to vector<8x256xf32>
    %123 = arith.mulf %122, %121 : vector<8x256xf32>
    %cst_62 = arith.constant -1.45315206 : f32
    %124 = vector.broadcast %cst_62 : f32 to vector<8x256xf32>
    %125 = arith.addf %123, %124 : vector<8x256xf32>
    %126 = arith.mulf %125, %121 : vector<8x256xf32>
    %cst_63 = arith.constant 1.42141378 : f32
    %127 = vector.broadcast %cst_63 : f32 to vector<8x256xf32>
    %128 = arith.addf %126, %127 : vector<8x256xf32>
    %129 = arith.mulf %128, %121 : vector<8x256xf32>
    %cst_64 = arith.constant -0.284496725 : f32
    %130 = vector.broadcast %cst_64 : f32 to vector<8x256xf32>
    %131 = arith.addf %129, %130 : vector<8x256xf32>
    %132 = arith.mulf %131, %121 : vector<8x256xf32>
    %cst_65 = arith.constant 0.254829586 : f32
    %133 = vector.broadcast %cst_65 : f32 to vector<8x256xf32>
    %134 = arith.addf %132, %133 : vector<8x256xf32>
    %135 = arith.mulf %134, %121 : vector<8x256xf32>
    %cst_66 = arith.constant 0.000000e+00 : f32
    %136 = vector.broadcast %cst_66 : f32 to vector<8x256xf32>
    %137 = arith.subf %136, %116 : vector<8x256xf32>
    %138 = arith.mulf %137, %116 : vector<8x256xf32>
    %139 = math.exp %138 : vector<8x256xf32>
    %140 = arith.mulf %135, %139 : vector<8x256xf32>
    %cst_67 = arith.constant 1.000000e+00 : f32
    %141 = vector.broadcast %cst_67 : f32 to vector<8x256xf32>
    %142 = arith.subf %141, %140 : vector<8x256xf32>
    %143 = arith.mulf %115, %142 : vector<8x256xf32>
    %cst_68 = arith.constant 1.000000e+00 : f32
    %144 = vector.broadcast %cst_68 : f32 to vector<8x256xf32>
    %145 = arith.addf %144, %143 : vector<8x256xf32>
    %146 = arith.mulf %108, %145 : vector<8x256xf32>
    %c0_69 = arith.constant 0 : index
    %c0_70 = arith.constant 0 : index
    %147 = vector.load %arg14[%c0_69, %c0_70] : memref<256x128xf32, #tpu.memory_space<vmem>>, vector<256x128xf32>
    %cst_71 = arith.constant dense<0.000000e+00> : vector<8x128xf32>
    %148 = tpu.matmul %146, %147, %cst_71 {dimension_numbers = #tpu.dot_dimension_numbers<[1], [0], [0], [1], [0, 0, 1, 1], [], []>} : vector<8x256xf32>, vector<256x128xf32>, vector<8x128xf32> -> vector<8x128xf32>
    %149 = arith.addf %8, %148 : vector<8x128xf32>
    %c0_72 = arith.constant 0 : index
    %c0_73 = arith.constant 0 : index
    %150 = vector.load %arg15[%c0_72, %c0_73] : memref<1x128xf32, #tpu.memory_space<vmem>>, vector<1x128xf32>
    %151 = vector.broadcast %150 : vector<1x128xf32> to vector<8x128xf32>
    %152 = arith.addf %149, %151 : vector<8x128xf32>
    %c0_74 = arith.constant 0 : index
    %c0_75 = arith.constant 0 : index
    %c0_76 = arith.constant 0 : index
    %153 = vector.load %arg16[%c0_74, %c0_75, %c0_76] : memref<1x8x128xf32, #tpu.memory_space<vmem>>, vector<1x8x128xf32>
    %154 = vector.shape_cast %153 : vector<1x8x128xf32> to vector<8x128xf32>
    %155 = vector.shape_cast %152 : vector<8x128xf32> to vector<1x8x128xf32>
    tpu.vector_store %arg16[%c0_74, %c0_75, %c0_76], %155 {strides = array<i32>} : memref<1x8x128xf32, #tpu.memory_space<vmem>>, vector<1x8x128xf32>,
    return
  }
  func.func @transform_0(%arg0: i32, %arg1: i32) -> (i32, i32, i32) {
    %c0_i32 = arith.constant 0 : i32
    %c0_i32_0 = arith.constant 0 : i32
    return %arg0, %arg1, %c0_i32 : i32, i32, i32
  }
  func.func @transform_1(%arg0: i32, %arg1: i32) -> (i32, i32, i32) {
    %c0_i32 = arith.constant 0 : i32
    %c0_i32_0 = arith.constant 0 : i32
    %c0_i32_1 = arith.constant 0 : i32
    return %arg0, %c0_i32, %c0_i32_0 : i32, i32, i32
  }
  func.func @transform_2(%arg0: i32, %arg1: i32) -> (i32, i32, i32, i32) {
    %c0_i32 = arith.constant 0 : i32
    %c0_i32_0 = arith.constant 0 : i32
    %c0_i32_1 = arith.constant 0 : i32
    %c0_i32_2 = arith.constant 0 : i32
    return %arg0, %c0_i32, %c0_i32_0, %c0_i32_1 : i32, i32, i32, i32
  }
  func.func @transform_3(%arg0: i32, %arg1: i32) -> (i32, i32) {
    %c0_i32 = arith.constant 0 : i32
    %c0_i32_0 = arith.constant 0 : i32
    %c0_i32_1 = arith.constant 0 : i32
    return %c0_i32, %c0_i32_0 : i32, i32
  }
  func.func @transform_4(%arg0: i32, %arg1: i32) -> (i32, i32) {
    %c0_i32 = arith.constant 0 : i32
    %c0_i32_0 = arith.constant 0 : i32
    %c0_i32_1 = arith.constant 0 : i32
    return %c0_i32, %c0_i32_0 : i32, i32
  }
  func.func @transform_5(%arg0: i32, %arg1: i32) -> (i32, i32) {
    %c0_i32 = arith.constant 0 : i32
    %c0_i32_0 = arith.constant 0 : i32
    %c0_i32_1 = arith.constant 0 : i32
    return %c0_i32, %c0_i32_0 : i32, i32
  }
  func.func @transform_6(%arg0: i32, %arg1: i32) -> (i32, i32) {
    %c0_i32 = arith.constant 0 : i32
    %c0_i32_0 = arith.constant 0 : i32
    %c0_i32_1 = arith.constant 0 : i32
    return %c0_i32, %c0_i32_0 : i32, i32
  }
  func.func @transform_7(%arg0: i32, %arg1: i32) -> (i32, i32) {
    %c0_i32 = arith.constant 0 : i32
    %c0_i32_0 = arith.constant 0 : i32
    %c0_i32_1 = arith.constant 0 : i32
    return %c0_i32, %c0_i32_0 : i32, i32
  }
  func.func @transform_8(%arg0: i32, %arg1: i32) -> (i32, i32) {
    %c0_i32 = arith.constant 0 : i32
    %c0_i32_0 = arith.constant 0 : i32
    %c0_i32_1 = arith.constant 0 : i32
    return %c0_i32, %c0_i32_0 : i32, i32
  }
  func.func @transform_9(%arg0: i32, %arg1: i32) -> (i32, i32) {
    %c0_i32 = arith.constant 0 : i32
    %c0_i32_0 = arith.constant 0 : i32
    %c0_i32_1 = arith.constant 0 : i32
    return %c0_i32, %c0_i32_0 : i32, i32
  }
  func.func @transform_10(%arg0: i32, %arg1: i32) -> (i32, i32) {
    %c0_i32 = arith.constant 0 : i32
    %c0_i32_0 = arith.constant 0 : i32
    %c0_i32_1 = arith.constant 0 : i32
    return %c0_i32, %c0_i32_0 : i32, i32
  }
  func.func @transform_11(%arg0: i32, %arg1: i32) -> (i32, i32) {
    %c0_i32 = arith.constant 0 : i32
    %c0_i32_0 = arith.constant 0 : i32
    %c0_i32_1 = arith.constant 0 : i32
    return %c0_i32, %c0_i32_0 : i32, i32
  }
  func.func @transform_12(%arg0: i32, %arg1: i32) -> (i32, i32) {
    %c0_i32 = arith.constant 0 : i32
    %c0_i32_0 = arith.constant 0 : i32
    %c0_i32_1 = arith.constant 0 : i32
    return %c0_i32, %c0_i32_0 : i32, i32
  }
  func.func @transform_13(%arg0: i32, %arg1: i32) -> (i32, i32) {
    %c0_i32 = arith.constant 0 : i32
    %c0_i32_0 = arith.constant 0 : i32
    %c0_i32_1 = arith.constant 0 : i32
    return %c0_i32, %c0_i32_0 : i32, i32
  }
  func.func @transform_14(%arg0: i32, %arg1: i32) -> (i32, i32, i32) {
    %c0_i32 = arith.constant 0 : i32
    %c0_i32_0 = arith.constant 0 : i32
    return %arg0, %arg1, %c0_i32 : i32, i32, i32
  }
}

</mosaic_0001>

<bundles_post_ra>
// kernel: tpu_custom_call.1
= control target key start
LH: loop header
LB: loop body
LE: loop exit
PB: predicated region body
PF: predicated region fallthrough
CT: control target
= control target key end

     0   :  { %s4363_s0 = inlined_call_operand.hbm [shape: f32[2,16,128], index: 0, kind: input, shape index: {}]   ;;  %s4364_s1 = inlined_call_operand.hbm [shape: f32[2,16,128], index: 1, kind: input, shape index: {}]   ;;  %s4365_s2 = inlined_call_operand.hbm [shape: f32[2,2,16,32], index: 2, kind: input, shape index: {}]   ;;  %s4366_s3 = inlined_call_operand.hbm [shape: f32[128,384], index: 3, kind: input, shape index: {}]   ;;  %s4367_s4 = inlined_call_operand.vmem [shape: f32[1,384], index: 4, kind: input, shape index: {}]   ;;  %s4368_s5 = inlined_call_operand.hbm [shape: f32[128,128], index: 5, kind: input, shape index: {}]   ;;  %s4369_s6 = inlined_call_operand.vmem [shape: f32[1,128], index: 6, kind: input, shape index: {}]   ;;  %s4370_s7 = inlined_call_operand.hbm [shape: f32[128,256], index: 7, kind: input, shape index: {}]   ;;  %s4371_s8 = inlined_call_operand.hbm [shape: f32[128,256], index: 8, kind: input, shape index: {}]   ;;  %s4372_s9 = inlined_call_operand.vmem [shape: f32[1,256], index: 9, kind: input, shape index: {}]   ;;  %s4373_s10 = inlined_call_operand.vmem [shape: f32[1,256], index: 10, kind: input, shape index: {}]   ;;  %s4374_s11 = inlined_call_operand.vmem [shape: f32[1,256], index: 11, kind: input, shape index: {}]   ;;  %s4375_s12 = inlined_call_operand.hbm [shape: f32[256,128], index: 12, kind: input, shape index: {}]   ;;  %s4376_s13 = inlined_call_operand.vmem [shape: f32[1,128], index: 13, kind: input, shape index: {}]   ;;  %s4377_s14 = inlined_call_operand.hbm [shape: f32[2,16,128], index: 14, kind: output, shape index: {}]  }
   0x1   :  { %4405 = sst [smem:[#allocation35_spill]] %s4363_s0 }
   0x2   :  { %4406 = sst [smem:[#allocation36_spill]] %s4364_s1 }
   0x3   :  { %4407 = sst [smem:[#allocation37_spill]] %s4365_s2 }
   0x4   :  { %4408 = sst [smem:[#allocation38_spill]] %s4366_s3 }
   0x5   :  { %4409 = sst [smem:[#allocation39_spill]] %s4367_s4 }
   0x6   :  { %4410 = sst [smem:[#allocation40_spill]] %s4368_s5 }
   0x7   :  { %4411 = sst [smem:[#allocation41_spill]] %s4369_s6 }
   0x8   :  { %4412 = sst [smem:[#allocation42_spill]] %s4370_s7 }
   0x9   :  { %4413 = sst [smem:[#allocation43_spill]] %s4371_s8 }
   0xa   :  { %4414 = sst [smem:[#allocation44_spill]] %s4372_s9 }
   0xb   :  { %4415 = sst [smem:[#allocation45_spill]] %s4373_s10 }
   0xc   :  { %4416 = sst [smem:[#allocation46_spill]] %s4374_s11 }
   0xd   :  { %4417 = sst [smem:[#allocation47_spill]] %s4375_s12 }
   0xe   :  { %4418 = sst [smem:[#allocation48_spill]] %s4376_s13 }
   0xf   :  { %4419 = sst [smem:[#allocation49_spill]] %s4377_s14 }
  0x10   :  { %19 = vsyncpa [#allocation6], 0 }
  0x11   :  { %21 = vsyncpa [#allocation6 + $0x1], 0 }
  0x12   :  { %22 = vsyncpa [#allocation9], 0 }
  0x13   :  { %24 = vsyncpa [#allocation9 + $0x1], 0 }
  0x14   :  { %25 = vsyncpa [#allocation12], 0 }
  0x15   :  { %26 = vsyncpa [#allocation15], 0 }
  0x16   :  { %27 = vsyncpa [#allocation18], 0 }
  0x17   :  { %28 = vsyncpa [#allocation7], 0 }
  0x18   :  { %30 = vsyncpa [#allocation7 + $0x1], 0  ;;  %s3650_s29 = smov 0   ;;  %s3652_s30 = smov 0  }
  0x19   :  { %s3654_s15 = smov 0   ;;  %s3656_s16 = smov 0  }
  0x1a   :  { %s3658_s17 = smov 0   ;;  %s3660_s18 = smov 0  }
  0x1b   :  { %s3662_s19 = smov 0   ;;  %s3664_s20 = smov 0  }
  0x1c   :  { %s3666_s21 = smov 0   ;;  %s3668_s22 = smov 0  }
  0x1d   :  { %s3670_s23 = smov 0  }
  0x1e LB: > { %4420 = sst [smem:[#allocation26_spill]] %s3509_s30  ;;  %s3706_s24 = sadd.s32 4294967295, %s3545_s23   ;;  %s3545_s23 = sphi %s3670_s23, %s36_s23   ;;  %s3541_s22 = sphi %s3668_s22, %s4489_s22   ;;  %s3537_s21 = sphi %s3666_s21, %s4488_s21   ;;  %s3533_s20 = sphi %s3664_s20, %s4487_s20   ;;  %s3529_s19 = sphi %s3662_s19, %s4486_s19   ;;  %s3525_s18 = sphi %s3660_s18, %s4494_s18   ;;  %s3521_s17 = sphi %s3658_s17, %s4493_s17   ;;  %s3517_s16 = sphi %s3656_s16, %s4492_s16   ;;  %s3513_s15 = sphi %s3654_s15, %s4491_s15   ;;  %s3509_s30 = sphi %s3652_s30, %s4490_s30   ;;  %s3505_s29 = sphi %s3650_s29, %s4484_s29  }
  0x1f   : > { %4421 = sst [smem:[#allocation27_spill]] %s3529_s19  ;;  %p2441_p0 = scmp.ge.s32.totalorder %s3545_s23, 1 }
  0x20   : > { %4422 = sst [smem:[#allocation28_spill]] %s3533_s20  ;;  %p4379_p1 = scmp.eq.s32.totalorder %s3706_s24, 0 }
  0x21   : > { %4423 = sst [smem:[#allocation29_spill]] %s3537_s21  ;;  %p392_p2 = scmp.lt.s32.totalorder %s3545_s23, 5 }
  0x22   : > { %4424 = sst [smem:[#allocation30_spill]] %s3541_s22  ;;  %s3547_s26 = smov [#allocation11]  }
  0x23   : > { %p3711_p3 = pnand %p2441_p0, %p392_p2  ;;  %s404_s27 = sshll.u32 %s3547_s26, 4  ;;  %s405_s27 = int_to_ptr.vmem [resolvable:$true] %s404_s27 }
  0x24   : > { %s3548_s14 = smov [#allocation14]   ;;  %s4428_s3 = sld [smem:[#allocation38_spill]] }
  0x25   : > { %s4425_s25 = scalar_select %p3711_p3, 1, 0 }
  0x26   : > { %p2982_p4 = pneg %p3711_p3  ;;  %s436_s13 = sshll.u32 %s3548_s14, 4  ;;  %s3723_s13 = int_to_ptr.vmem [resolvable:$true] %s436_s13 }
  0x27   : > { %4426 = sst [smem:[#allocation31_spill]] %s4425_s25 }
  0x28   : > { %p3719_p5 = pnand %p2982_p4, %p4379_p1 }
  0x2a   : > { %s4427_s28 = scalar_select %p3719_p5, 1, 0 }
  0x2b   : > { %s3177_s10 = scalar_lea.hbm %s4428_s3, 6144  ;;  %p3733_p7 = pneg %p3719_p5 }
  0x2c   : > { %p3178_p6 = scmp.ne.s32.totalorder %s4428_s3, %s3177_s10  ;;  %p3184_p10 = scmp.lt.u32.totalorder %s3177_s10, %s4428_s3 }
  0x2e   : > { %p3180_p8 = pnand %p3733_p7, %p3178_p6 }
  0x30   : > { %p3181_p9 = pneg %p3180_p8 }
  0x32   : > { %p3186_p11 = pnand %p3184_p10, %p3181_p9 }
  0x34   : > { %3189 = shalt.err (!%p3186_p11)
}
  0x35   : > { %s3190_s11 = scalar_lea.vmem %s405_s27, 6144  ;;  %p3198_p2 = scmp.lt.s32.totalorder %s405_s27, %s405_s27 }
  0x36   : > { %p3191_p12 = scmp.ne.s32.totalorder %s405_s27, %s3190_s11  ;;  %p3199_p4 = scmp.lt.s32.totalorder %s3190_s11, %s3190_s11 }
  0x38   : > { %p3193_p13 = pnand %p3191_p12, %p3733_p7  ;;  %p3200_p1 = por %p3199_p4, %p3198_p2 }
  0x3a   : > { %p3194_p0 = pneg %p3193_p13 }
  0x3c   : > { %p3201_p3 = pnand %p3200_p1, %p3194_p0 }
  0x3e   : > { %3204 = shalt.err (!%p3201_p3)
}
  0x3f   : > { %s3549_s6 = smov 384   ;;  %s3550_s9 = smov 24  }
  0x40   : > { %2985 = dma.hbm_to_vmem [thread:$0]  (!%p3719_p5), %s4428_s3, 6144, %s405_s27, [#allocation12], %s3549_s6, %s3549_s6, %s3550_s9  }
  0x41   : > { %s4430_s7 = sld [smem:[#allocation42_spill]] }
  0x47   : > { %s3205_s19 = scalar_lea.hbm %s4430_s7, 4096 }
  0x48   : > { %p3206_p6 = scmp.ne.s32.totalorder %s4430_s7, %s3205_s19  ;;  %p3212_p8 = scmp.lt.u32.totalorder %s3205_s19, %s4430_s7 }
  0x4a   : > { %p3208_p1 = pnand %p3206_p6, %p3733_p7 }
  0x4c   : > { %p3209_p3 = pneg %p3208_p1 }
  0x4e   : > { %p3214_p9 = pnand %p3212_p8, %p3209_p3 }
  0x50   : > { %3217 = shalt.err (!%p3214_p9)
}
  0x51   : > { %s3218_s27 = scalar_lea.vmem %s3723_s13, 4096  ;;  %p3226_p13 = scmp.lt.s32.totalorder %s3723_s13, %s3723_s13 }
  0x52   : > { %p3219_p10 = scmp.ne.s32.totalorder %s3723_s13, %s3218_s27  ;;  %p3227_p0 = scmp.lt.s32.totalorder %s3218_s27, %s3218_s27 }
  0x54   : > { %p3221_p11 = pnand %p3219_p10, %p3733_p7  ;;  %p3228_p2 = por %p3227_p0, %p3226_p13 }
  0x56   : > { %p3222_p12 = pneg %p3221_p11 }
  0x58   : > { %p3229_p4 = pnand %p3228_p2, %p3222_p12 }
  0x5a   : > { %3232 = shalt.err (!%p3229_p4)
}
  0x5b   : > { %s4385_s2 = smov 256   ;;  %s4386_s0 = smov 16  }
  0x5c   : > { %2991 = dma.hbm_to_vmem [thread:$0]  (!%p3719_p5), %s4430_s7, 4096, %s3723_s13, [#allocation15], %s4385_s2, %s4385_s2, %s4386_s0  }
  0x5d   : > { %p4388_p6 = scmp.eq.s32.totalorder %s3545_s23, 0  ;;  %p90_p1 = scmp.ne.s32.totalorder %s3513_s15, %s3509_s30 }
  0x5e   : > { %p96_p3 = scmp.ne.s32.totalorder %s3509_s30, %s3505_s29  ;;  %p4431_p9 = scmp.eq.s32.totalorder %s3706_s24, 0 }
  0x5f   : > { %p92_p8 = por %p90_p1, %p4388_p6  ;;  %p4387_p11 = scmp.lt.s32.totalorder %s3545_s23, 4 }
  0x60   : > { %p3784_p10 = por %p96_p3, %p4431_p9  ;;  %s508_s9 = sand.u32 1, %s3545_s23  }
  0x61   : > { %s510_s4 = sand.u32 1, %s3513_s15   ;;  %s2486_s20 = sshll.u32 %s3541_s22, 8 }
  0x62   : > { %s4432_s6 = scalar_select %p3784_p10, 1, 0 }
  0x63   : > { %s2451_s10 = sshll.u32 %s510_s4, 4  ;;  %s4434_s1 = sld [smem:[#allocation36_spill]] }
  0x64   : > { %4433 = sst [smem:[#allocation32_spill]] %s4432_s6  ;;  %s512_s13 = scalar_lea.vmem [#allocation8], %s2451_s10 }
  0x65   : > { %s519_s29 = sshll.u32 %s512_s13, 4  ;;  %p3801_p12 = pnand %p4387_p11, %p92_p8  ;;  %s3797_s29 = int_to_ptr.vmem [resolvable:$true] %s519_s29 }
  0x66   : > { %s3805_s25 = sshll.u32 %s510_s4, 5  ;;  %s3807_s14 = scalar_lea.sflag [#allocation9], %s508_s9 }
  0x67   : > { %s4435_s19 = scalar_select %p3801_p12, 1, 0 }
  0x68   : > { %p4395_p0 = pneg %p3801_p12 }
  0x69   : > { %s3795_s27 = scalar_lea.hbm %s4434_s1, %s2486_s20  ;;  %s3238_s13 = scalar_lea.hbm %s4434_s1, 512 }
  0x6a   : > { %s3233_s20 = scalar_lea.hbm %s3795_s27, 256  ;;  %p3239_p1 = scmp.lt.u32.totalorder %s3795_s27, %s4434_s1 }
  0x6b   : > { %p3234_p13 = scmp.ne.s32.totalorder %s3795_s27, %s3233_s20  ;;  %p3240_p3 = scmp.lt.u32.totalorder %s3238_s13, %s3233_s20 }
  0x6c   : > { %p3242_p9 = scmp.lt.u32.totalorder %s3233_s20, %s3795_s27 }
  0x6d   : > { %p3236_p2 = pnand %p4395_p0, %p3234_p13  ;;  %p3241_p8 = por %p3240_p3, %p3239_p1 }
  0x6f   : > { %p3237_p4 = pneg %p3236_p2  ;;  %p3243_p11 = por %p3242_p9, %p3241_p8 }
  0x71   : > { %p3244_p6 = pnand %p3243_p11, %p3237_p4 }
  0x73   : > { %3247 = shalt.err (!%p3244_p6)
}
  0x74   : > { %s3248_s9 = scalar_lea.vmem %s3797_s29, 256  ;;  %s3553_s4 = smov [#allocation8]  }
  0x75   : > { %p3249_p13 = scmp.ne.s32.totalorder %s3797_s29, %s3248_s9  ;;  %s3253_s10 = sshll.u32 %s3553_s4, 4  ;;  %s3254_s10 = int_to_ptr.vmem [resolvable:$false] %s3253_s10 }
  0x76   : > { %s3255_s2 = scalar_lea.vmem %s3254_s10, 512  ;;  %p3256_p5 = scmp.lt.s32.totalorder %s3797_s29, %s3254_s10 }
  0x77   : > { %p3251_p2 = pnand %p3249_p13, %p4395_p0  ;;  %p3257_p1 = scmp.lt.s32.totalorder %s3255_s2, %s3248_s9 }
  0x79   : > { %p3252_p10 = pneg %p3251_p2  ;;  %p3258_p3 = por %p3257_p1, %p3256_p5 }
  0x7b   : > { %p3259_p8 = pnand %p3258_p3, %p3252_p10 }
  0x7d   : > { %3262 = shalt.err (!%p3259_p8)
}
  0x7e   : > { %s4398_s0 = smov 128   ;;  %s4399_s20 = smov 8  }
  0x7f   : > { %3004 = dma.hbm_to_vmem [thread:$0]  (!%p3801_p12), %s3795_s27, 256, %s3797_s29, %s3807_s14, %s4398_s0, %s4398_s0, %s4399_s20  }
  0x80   : > { %s533_s11 = scalar_lea.vmem [#allocation10], %s3805_s25  ;;  %s3556_s9 = smov [#allocation13]  }
  0x81   : > { %s3839_s13 = sshll.u32 %s533_s11, 4  ;;  %s420_s4 = sshll.u32 %s3556_s9, 4  ;;  %s421_s4 = int_to_ptr.vmem [resolvable:$true] %s420_s4  ;;  %s3975_s13 = int_to_ptr.vmem [resolvable:$true] %s3839_s13 }
  0x82   : > { %s4436_s5 = sld [smem:[#allocation40_spill]] }
  0x88   : > { %s3263_s1 = scalar_lea.hbm %s4436_s5, 2048 }
  0x89   : > { %p3264_p5 = scmp.ne.s32.totalorder %s4436_s5, %s3263_s1  ;;  %p3270_p11 = scmp.lt.u32.totalorder %s3263_s1, %s4436_s5 }
  0x8b   : > { %p3266_p6 = pnand %p3264_p5, %p3733_p7 }
  0x8d   : > { %p3267_p10 = pneg %p3266_p6 }
  0x8f   : > { %p3272_p4 = pnand %p3270_p11, %p3267_p10 }
  0x91   : > { %3275 = shalt.err (!%p3272_p4)
}
  0x92   : > { %s3276_s27 = scalar_lea.vmem %s421_s4, 2048  ;;  %p3284_p1 = scmp.lt.s32.totalorder %s421_s4, %s421_s4 }
  0x93   : > { %p3277_p9 = scmp.ne.s32.totalorder %s421_s4, %s3276_s27  ;;  %p3285_p3 = scmp.lt.s32.totalorder %s3276_s27, %s3276_s27 }
  0x95   : > { %p3279_p13 = pnand %p3277_p9, %p3733_p7  ;;  %p3286_p8 = por %p3285_p3, %p3284_p1 }
  0x97   : > { %p3280_p2 = pneg %p3279_p13 }
  0x99   : > { %p3287_p0 = pnand %p3286_p8, %p3280_p2 }
  0x9b   : > { %3290 = shalt.err (!%p3287_p0)
}
  0x9c   : > { %p4437_p5 = scmp.ne.s32.totalorder %s4427_s28, 0  ;;  %s3557_s7 = smov [#allocation16]  }
  0x9d   : > { %s449_s30 = sshll.u32 %s3557_s7, 4  ;;  %s3558_s6 = smov [#allocation17]   ;;  %s450_s30 = int_to_ptr.vmem [resolvable:$true] %s449_s30 }
  0x9e   : > { %2988 = dma.hbm_to_vmem [thread:$0]  (!%p4437_p5), %s4436_s5, 2048, %s421_s4, [#allocation12], %s4398_s0, %s4398_s0, %s4399_s20  }
  0x9f   : > { %s471_s29 = sshll.u32 %s3558_s6, 4  ;;  %s4438_s8 = sld [smem:[#allocation43_spill]]  ;;  %s472_s29 = int_to_ptr.vmem [resolvable:$true] %s471_s29 }
  0xa5   : > { %s3291_s9 = scalar_lea.hbm %s4438_s8, 4096 }
  0xa6   : > { %p3292_p0 = scmp.ne.s32.totalorder %s4438_s8, %s3291_s9  ;;  %p3298_p11 = scmp.lt.u32.totalorder %s3291_s9, %s4438_s8 }
  0xa8   : > { %p3294_p6 = pnand %p3292_p0, %p3733_p7 }
  0xaa   : > { %p3295_p10 = pneg %p3294_p6 }
  0xac   : > { %p3300_p4 = pnand %p3298_p11, %p3295_p10 }
  0xae   : > { %3303 = shalt.err (!%p3300_p4)
}
  0xaf   : > { %s3304_s4 = scalar_lea.vmem %s450_s30, 4096  ;;  %p3312_p1 = scmp.lt.s32.totalorder %s450_s30, %s450_s30 }
  0xb0   : > { %p3305_p9 = scmp.ne.s32.totalorder %s450_s30, %s3304_s4  ;;  %p3313_p3 = scmp.lt.s32.totalorder %s3304_s4, %s3304_s4 }
  0xb2   : > { %p3307_p13 = pnand %p3305_p9, %p3733_p7  ;;  %p3314_p8 = por %p3313_p3, %p3312_p1 }
  0xb4   : > { %p3308_p2 = pneg %p3307_p13 }
  0xb6   : > { %p3315_p12 = pnand %p3314_p8, %p3308_p2 }
  0xb8   : > { %3318 = shalt.err (!%p3315_p12)
}
  0xb9   : > { %s4439_s1 = smov 16   ;;  %s4440_s7 = smov 256  }
  0xba   : > { %2994 = dma.hbm_to_vmem [thread:$0]  (!%p4437_p5), %s4438_s8, 4096, %s450_s30, [#allocation15], %s4440_s7, %s4440_s7, %s4439_s1  }
  0xbb   : > { %s4441_s12 = sld [smem:[#allocation47_spill]] }
  0xc1   : > { %s3319_s10 = scalar_lea.hbm %s4441_s12, 4096 }
  0xc2   : > { %p3320_p0 = scmp.ne.s32.totalorder %s4441_s12, %s3319_s10  ;;  %p3326_p10 = scmp.lt.u32.totalorder %s3319_s10, %s4441_s12 }
  0xc4   : > { %p3322_p12 = pnand %p3320_p0, %p3733_p7 }
  0xc6   : > { %p3323_p6 = pneg %p3322_p12 }
  0xc8   : > { %p3328_p11 = pnand %p3326_p10, %p3323_p6 }
  0xca   : > { %3331 = shalt.err (!%p3328_p11)
}
  0xcb   : > { %s3332_s6 = scalar_lea.vmem %s472_s29, 4096  ;;  %p3340_p2 = scmp.lt.s32.totalorder %s472_s29, %s472_s29 }
  0xcc   : > { %p3333_p4 = scmp.ne.s32.totalorder %s472_s29, %s3332_s6  ;;  %p3341_p1 = scmp.lt.s32.totalorder %s3332_s6, %s3332_s6 }
  0xce   : > { %p3335_p9 = pnand %p3333_p4, %p3733_p7  ;;  %p3342_p3 = por %p3341_p1, %p3340_p2 }
  0xd0   : > { %p3336_p13 = pneg %p3335_p9 }
  0xd2   : > { %p3343_p8 = pnand %p3342_p3, %p3336_p13 }
  0xd4   : > { %3346 = shalt.err (!%p3343_p8)
}
  0xd5   : > { %2997 = dma.hbm_to_vmem [thread:$0]  (!%p4437_p5), %s4441_s12, 4096, %s472_s29, [#allocation18], %s4398_s0, %s4398_s0, %s4399_s20  }
  0xd6   : > { %s2440_s28 = sadd.s32 4294967294, %s3545_s23   ;;  %s45_s26 = sadd.s32 1, %s3537_s21 }
  0xd7   : > { %s48_s7 = sadd.s32 1, %s3541_s22  ;;  %p46_p7 = scmp.ge.s32.totalorder %s45_s26, 2 }
  0xd8   : > { %s57_s25 = sadd.s32 1, %s3525_s18  ;;  %p64_p0 = scmp.ne.s32.totalorder %s3525_s18, %s3521_s17 }
  0xd9   : > { %p70_p12 = scmp.ne.s32.totalorder %s3521_s17, %s3517_s16  ;;  %s4496_s26 = smov (%p46_p7, %s45_s26), 0 }
  0xda   : > { %4442 = sst [smem:[#allocation33_spill]] %s4496_s26  ;;  %s4498_s7 = smov (!%p46_p7, %s48_s7), %s3541_s22 }
  0xdb   : > { %s53_s11 = ssub.s32 %s3537_s21, %s4496_s26  ;;  %p4443_p6 = scmp.eq.s32.totalorder %s3545_s23, 0 }
  0xdc   : > { %p50_p10 = scmp.ge.s32.totalorder %s4498_s7, 2  ;;  %p4445_p11 = scmp.eq.s32.totalorder %s3706_s24, 0 }
  0xdd   : > { %p3919_p5 = por %p4443_p6, %p64_p0  ;;  %s83_s10 = sadd.s32 1, %s3513_s15 }
  0xde   : > { %p3928_p4 = por %p4445_p11, %p70_p12  ;;  %p379_p9 = scmp.eq.s32.totalorder %s3706_s24, 3 }
  0xdf   : > { %s4500_s7 = smov (%p50_p10, %s4498_s7), 0  ;;  %p385_p2 = scmp.eq.s32.totalorder %s2440_s28, 3 }
  0xe0   : > { %4447 = sst [smem:[#allocation34_spill]] %s4500_s7  ;;  %p3936_p13 = por %p379_p9, %p64_p0 }
  0xe1   : > { %s52_s27 = ssub.s32 %s3541_s22, %s4500_s7  ;;  %s488_s3 = sand.u32 1, %s3525_s18  }
  0xe2   : > { %s4448_s2 = scalar_select %p3936_p13, 1, 0 }
  0xe3   : > { %s54_s4 = sor.u32 %s53_s11, %s52_s27  ;;  %p81_p1 = scmp.eq.s32.totalorder %s52_s27, 0 }
  0xe4   : > { %p55_p3 = scmp.eq.s32.totalorder %s54_s4, 0  ;;  %p3946_p8 = por %p385_p2, %p70_p12 }
  0xe5   : > { %s3951_s30 = scalar_select %p81_p1, %s3513_s15, %s83_s10  }
  0xe6   : > { %s4449_s6 = scalar_select %p3946_p8, 1, 0 }
  0xe7   : > { %s3954_s1 = scalar_select %p55_p3, %s3525_s18, %s57_s25  }
  0xe8   : > { %s2448_s0 = sshll.u32 %s488_s3, 3  ;;  %s2449_s28 = sshll.u32 %s3541_s22, 1 }
  0xe9   : > { %s497_s20 = sadd.s32 %s3537_s21, %s2449_s28  ;;  %s492_s5 = scalar_lea.vmem [#allocation5], %s2448_s0 }
  0xea   : > { %s501_s8 = sshll.u32 %s492_s5, 4  ;;  %s2450_s12 = sshll.u32 %s497_s20, 7  ;;  %s3958_s8 = int_to_ptr.vmem [resolvable:$true] %s501_s8 }
  0xeb   : > { %s4450_s4 = sld [smem:[#allocation35_spill]]  ;;  %p4451_p7 = scmp.lt.s32.totalorder %s3545_s23, 4 }
  0xec   : > { %s2487_s5 = sshll.u32 %s3541_s22, 9  ;;  %s4453_s10 = sld [smem:[#allocation37_spill]] }
  0xed   : > { %p3969_p0 = pnand %p4451_p7, %p3919_p5  ;;  %s489_s29 = scalar_lea.sflag [#allocation6], %s488_s3 }
  0xef   : > { %p3349_p6 = pneg %p3969_p0 }
  0xf1   : > { %s3963_s7 = scalar_lea.hbm %s4450_s4, %s2450_s12  ;;  %s3352_s26 = scalar_lea.hbm %s4450_s4, 512 }
  0xf2   : > { %s3980_s12 = scalar_lea.hbm %s4453_s10, %s2487_s5  ;;  %s3347_s28 = scalar_lea.hbm %s3963_s7, 128 }
  0xf3   : > { %p3348_p12 = scmp.ne.s32.totalorder %s3963_s7, %s3347_s28  ;;  %p3353_p11 = scmp.lt.u32.totalorder %s3963_s7, %s4450_s4 }
  0xf4   : > { %p3354_p9 = scmp.lt.u32.totalorder %s3352_s26, %s3347_s28  ;;  %p3356_p1 = scmp.lt.u32.totalorder %s3347_s28, %s3963_s7 }
  0xf5   : > { %p3350_p5 = pnand %p3349_p6, %p3348_p12 }
  0xf6   : > { %p3355_p2 = por %p3354_p9, %p3353_p11 }
  0xf7   : > { %p3351_p10 = pneg %p3350_p5 }
  0xf8   : > { %p3357_p3 = por %p3356_p1, %p3355_p2 }
  0xfa   : > { %p3358_p7 = pnand %p3357_p3, %p3351_p10 }
  0xfc   : > { %3361 = shalt.err (!%p3358_p7)
}
  0xfd   : > { %s3362_s3 = scalar_lea.vmem %s3958_s8, 128  ;;  %s3559_s5 = smov [#allocation5]  }
  0xfe   : > { %p3363_p12 = scmp.ne.s32.totalorder %s3958_s8, %s3362_s3  ;;  %s3367_s0 = sshll.u32 %s3559_s5, 4  ;;  %s3368_s0 = int_to_ptr.vmem [resolvable:$false] %s3367_s0 }
  0xff   : > { %s3369_s21 = scalar_lea.vmem %s3368_s0, 256  ;;  %p3370_p13 = scmp.lt.s32.totalorder %s3958_s8, %s3368_s0 }
 0x100   : > { %p3365_p5 = pnand %p3363_p12, %p3349_p6  ;;  %p3371_p11 = scmp.lt.s32.totalorder %s3369_s21, %s3362_s3 }
 0x102   : > { %p3366_p8 = pneg %p3365_p5  ;;  %p3372_p9 = por %p3371_p11, %p3370_p13 }
 0x104   : > { %p3373_p2 = pnand %p3372_p9, %p3366_p8 }
 0x106   : > { %3376 = shalt.err (!%p3373_p2)
}
 0x107   : > { %3001 = dma.hbm_to_vmem [thread:$0]  (!%p3969_p0), %s3963_s7, 128, %s3958_s8, %s489_s29  }
 0x108   : > { %s3377_s22 = scalar_lea.hbm %s3980_s12, 512  ;;  %p4454_p10 = scmp.ne.s32.totalorder %s4435_s19, 0 }
 0x109   : > { %p3378_p6 = scmp.ne.s32.totalorder %s3980_s12, %s3377_s22  ;;  %s3382_s28 = scalar_lea.hbm %s4453_s10, 1024 }
 0x10a   : > { %p4455_p1 = pneg %p4454_p10  ;;  %p3383_p13 = scmp.lt.u32.totalorder %s3980_s12, %s4453_s10 }
 0x10b   : > { %p3384_p8 = scmp.lt.u32.totalorder %s3382_s28, %s3377_s22  ;;  %p3386_p5 = scmp.lt.u32.totalorder %s3377_s22, %s3980_s12 }
 0x10c   : > { %p3380_p3 = pnand %p3378_p6, %p4455_p1 }
 0x10d   : > { %p3385_p12 = por %p3384_p8, %p3383_p13 }
 0x10e   : > { %p3381_p7 = pneg %p3380_p3 }
 0x10f   : > { %p3387_p11 = por %p3386_p5, %p3385_p12 }
 0x111   : > { %p3388_p9 = pnand %p3387_p11, %p3381_p7 }
 0x113   : > { %3391 = shalt.err (!%p3388_p9)
}
 0x114   : > { %s3392_s8 = scalar_lea.vmem %s3975_s13, 512  ;;  %p4456_p2 = pmov %p4455_p1 }
 0x115   : > { %p3393_p0 = scmp.ne.s32.totalorder %s3975_s13, %s3392_s8  ;;  %s3560_s7 = smov [#allocation10]  }
 0x116   : > { %s3397_s29 = sshll.u32 %s3560_s7, 4  ;;  %s3398_s29 = int_to_ptr.vmem [resolvable:$false] %s3397_s29 }
 0x117   : > { %p3395_p6 = pnand %p3393_p0, %p4456_p2  ;;  %s3399_s27 = scalar_lea.vmem %s3398_s29, 1024 }
 0x118   : > { %p3400_p3 = scmp.lt.s32.totalorder %s3975_s13, %s3398_s29  ;;  %p3401_p13 = scmp.lt.s32.totalorder %s3399_s27, %s3392_s8 }
 0x119   : > { %p3396_p1 = pneg %p3395_p6 }
 0x11a   : > { %p3402_p8 = por %p3401_p13, %p3400_p3 }
 0x11c   : > { %p3403_p12 = pnand %p3402_p8, %p3396_p1 }
 0x11e   : > { %3406 = shalt.err (!%p3403_p12)
}
 0x11f   : > { %s4457_s3 = smov 8   ;;  %s4458_s5 = smov 128  }
 0x120   : > { %3007 = dma.hbm_to_vmem [thread:$0]  (!%p4454_p10), %s3980_s12, 512, %s3975_s13, %s3807_s14, %s4458_s5, %s4458_s5, %s4457_s3  }
 0x121   : > { %s4459_s0 = sld [smem:[#allocation31_spill]] }
 0x127   : > { %p4460_p7 = scmp.ne.s32.totalorder %s4459_s0, 0 }
 0x128   : > { %s4037_s21 = sand.u32 (!%p4460_p7), 1, %s3521_s17  }
 0x129   : > { %552 = sbr.rel (%p4460_p7) target bundleno = 3797 (0xed5), region = 76  ;;  %s2458_s22 = sshll.u32 (!%p4460_p7), %s4037_s21, 3 }
 0x12a   : > { %s555_s26 = scalar_lea.sflag (!%p4460_p7), [#allocation6], %s4037_s21  ;;  %s4041_s20 = scalar_lea.vmem (!%p4460_p7), [#allocation5], %s2458_s22 }
 0x130   : > { %3480 = dma.done.wait (%p3928_p4), %s555_s26, 128  }
 0x131   : > { %3482 = vsyncadd (%p3928_p4), %s555_s26, 4294967168  ;;  %s4461_s19 = sld [smem:[#allocation26_spill]]  ;;  %s563_s13 = sand.u32 1, %s3706_s24  }
 0x132   : > { %s4462_s14 = sld [smem:[#allocation32_spill]]  ;;  %s564_s11 = scalar_lea.sflag [#allocation9], %s563_s13 }
 0x137   : > { %s565_s12 = sand.u32 1, %s4461_s19  }
 0x138   : > { %s4049_s28 = sshll.u32 %s565_s12, 4  ;;  %p4463_p10 = scmp.ne.s32.totalorder %s4462_s14, 0 }
 0x139   : > { %s567_s25 = scalar_lea.vmem [#allocation8], %s4049_s28 }
 0x13a   : > { %3484 = dma.done.wait (%p4463_p10), %s564_s11, 768  }
 0x13b   : > { %3486 = vsyncadd (%p4463_p10), %s564_s11, 4294966528  ;;  %s2460_s8 = sshll.u32 %s565_s12, 5  ;;  %p4464_p4 = scmp.eq.s32.totalorder %s3706_s24, 0 }
 0x13c   : > { %s4056_s7 = scalar_lea.vmem [#allocation10], %s2460_s8 }
 0x13d   : > { %3488 = dma.done.wait (%p4464_p4), [#allocation12], 8192   ;;  %p4465_p5 = pmov %p4464_p4 }
 0x13e   : > { %p4466_p11 = pmov %p4464_p4 }
 0x13f   : > { %3490 = vsyncadd (%p4465_p5), [#allocation12], 4294959104 }
 0x140   : > { %3492 = dma.done.wait (%p4466_p11), [#allocation15], 8192   ;;  %p4467_p9 = pmov %p4464_p4 }
 0x141   : > { %p4468_p0 = pmov %p4464_p4 }
 0x142   : > { %3494 = vsyncadd (%p4467_p9), [#allocation15], 4294959104 }
 0x143   : > { %3496 = dma.done.wait (%p4468_p0), [#allocation18], 4096   ;;  %p4469_p2 = pmov %p4468_p0 }
 0x144   : > { %s4070_s9 = scalar_lea.vmem [#allocation19], %s2458_s22  ;;  %s4470_s29 = sld [smem:[#allocation27_spill]] }
 0x145   : > { %3498 = vsyncadd (%p4469_p2), [#allocation18], 4294963200 }
 0x14a   : > { %p2467_p6 = scmp.ne.s32.totalorder %s4470_s29, 0 }
 0x14b   : > { %v722_v0 = vld [vmem:[#allocation11 + $0x8] sm:$0xff] (!%p2467_p6)  ;;  %v725_v1 = vld [vmem:[#allocation11 + $0x20] sm:$0xff] (!%p2467_p6)  ;;  %v724_v4 = vld [vmem:[#allocation11 + $0x18] sm:$0xff] (!%p2467_p6)  ;;  %v3561_v7 = vmov (!%p2467_p6), 0.0   ;;  %s3562_s24 = smov (!%p2467_p6), 64   ;;  %s3563_s27 = smov (!%p2467_p6), 32  }
 0x14c   : > { %654 = sbr.rel (%p2467_p6) target bundleno = 895 (0x37f), region = 112  ;;  %v721_v2 = vld [vmem:[#allocation11] sm:$0xff] (!%p2467_p6)  ;;  %v2732_v3 = vpack.c.bf16 (!%p2467_p6), %v725_v1, %v722_v0  ;;  %v728_v5 = vld [vmem:[#allocation11 + $0x38] sm:$0xff] (!%p2467_p6)  ;;  %v731_v6 = vld [vmem:[#allocation11 + $0x50] sm:$0xff] (!%p2467_p6)  ;;  %850 = vmatprep.mubr.f32.mxu0 (!%p2467_p6), %v3561_v7  ;;  %s3564_s3 = smov (!%p2467_p6), 96   ;;  %vm683_vm0 = vcmask (!%p2467_p6), 261120  }
 0x14d   : > { %v2734_v8 = vpack.c.bf16 (!%p2467_p6), %v724_v4, %v721_v2  ;;  %v2736_v9 = vpack.c.bf16 (!%p2467_p6), %v731_v6, %v728_v5  ;;  %v727_v10 = vld [vmem:[#allocation11 + $0x30] sm:$0xff] (!%p2467_p6)  ;;  %v730_v11 = vld [vmem:[#allocation11 + $0x48] sm:$0xff] (!%p2467_p6)  ;;  %v737_v13 = vld [vmem:[#allocation11 + $0x80] sm:$0xff] (!%p2467_p6)  ;;  %s4471_s22 = sld [smem:[#allocation39_spill]] (!%p2467_p6)  ;;  %s3565_s26 = smov (!%p2467_p6), 1   ;;  %vm686_vm1 = vcmask (!%p2467_p6), 523264  }
 0x14e   : > { %v734_v12 = vld [vmem:[#allocation11 + $0x68] sm:$0xff] (!%p2467_p6)  ;;  %2733 = vmatprep.subr.bf16.mxu0 (!%p2467_p6), %v2732_v3  ;;  %v2738_v14 = vpack.c.bf16 (!%p2467_p6), %v730_v11, %v727_v10  ;;  %v733_v16 = vld [vmem:[#allocation11 + $0x60] sm:$0xff] (!%p2467_p6)  ;;  %v736_v17 = vld [vmem:[#allocation11 + $0x78] sm:$0xff] (!%p2467_p6)  ;;  %s3566_s19 = smov (!%p2467_p6), 127   ;;  %vm689_vm2 = vcmask (!%p2467_p6), 785408   ;;  %vm1012_vm4 = vcmask (!%p2467_p6), 130048  }
 0x14f   : > { %2735 = vmatpush1.bf16.msra.mxu0 (!%p2467_p6), %v2734_v8  ;;  %v2740_v15 = vpack.c.bf16 (!%p2467_p6), %v737_v13, %v734_v12  ;;  %v740_v18 = vld [vmem:[#allocation11 + $0x98] sm:$0xff] (!%p2467_p6)  ;;  %v743_v19 = vld [vmem:[#allocation11 + $0xb0] sm:$0xff] (!%p2467_p6)  ;;  %v2742_v20 = vpack.c.bf16 (!%p2467_p6), %v736_v17, %v733_v16  ;;  %v742_v23 = vld [vmem:[#allocation11 + $0xa8] sm:$0xff] (!%p2467_p6) }
 0x150   : > { %2737 = vmatprep.subr.bf16.mxu0 (!%p2467_p6), %v2736_v9  ;;  %v2744_v21 = vpack.c.bf16 (!%p2467_p6), %v743_v19, %v740_v18  ;;  %v739_v22 = vld [vmem:[#allocation11 + $0x90] sm:$0xff] (!%p2467_p6)  ;;  %v746_v24 = vld [vmem:[#allocation11 + $0xc8] sm:$0xff] (!%p2467_p6)  ;;  %v749_v25 = vld [vmem:[#allocation11 + $0xe0] sm:$0xff] (!%p2467_p6) }
 0x151   : > { %v659_v26 = vld [vmem:[%s567_s25] sm:$0xff] (!%p2467_p6)  ;;  %v2746_v28 = vpack.c.bf16 (!%p2467_p6), %v742_v23, %v739_v22  ;;  %v2748_v29 = vpack.c.bf16 (!%p2467_p6), %v749_v25, %v746_v24  ;;  %v748_v31 = vld [vmem:[#allocation11 + $0xd8] sm:$0xff] (!%p2467_p6)  ;;  %v4083_v32 = vld [vmem:[%s4056_s7 + $0x8] sm:$0xff] (!%p2467_p6) }
 0x152   : > { %v4077_v27 = vld [vmem:[%s4056_s7] sm:$0xff] (!%p2467_p6)  ;;  %2622 = vmatprep.mubr.f32.mxu1 (!%p2467_p6), %v659_v26  ;;  %v752_v33 = vld [vmem:[#allocation11 + $0xf8] sm:$0xff] (!%p2467_p6)  ;;  %v755_v34 = vld [vmem:[#allocation11 + $0x110] sm:$0xff] (!%p2467_p6) }
 0x153   : > { %2739 = vmatpush1.bf16.msra.mxu0 %v2738_v14  ;;  %671 = vrot.lane.b32.xlu1 %v4077_v27, %s3562_s24  ;;  %v745_v30 = vld [vmem:[#allocation11 + $0xc0] sm:$0xff]  ;;  %v4086_v35 = vld [vmem:[%s4056_s7 + $0x10] sm:$0xff]  ;;  %v2752_v37 = vpack.c.bf16 %v755_v34, %v752_v33  ;;  %v754_v39 = vld [vmem:[#allocation11 + $0x108] sm:$0xff] }
 0x154   : > { %2741 = vmatprep.subr.bf16.mxu0 %v2740_v15  ;;  %665 = vrot.lane.b32.xlu0 %v4077_v27, %s3563_s27  ;;  %v2750_v36 = vpack.c.bf16 %v748_v31, %v745_v30  ;;  %v751_v38 = vld [vmem:[#allocation11 + $0xf0] sm:$0xff]  ;;  %v4091_v40 = vld [vmem:[%s4056_s7 + $0x18] sm:$0xff]  ;;  %v758_v41 = vld [vmem:[#allocation11 + $0x128] sm:$0xff]  ;;  %v655_v15 = vlaneseq }
 0x155   : > { %v761_v42 = vld [vmem:[#allocation11 + $0x140] sm:$0xff]  ;;  %v2754_v43 = vpack.c.bf16 %v754_v39, %v751_v38  ;;  %v760_v46 = vld [vmem:[#allocation11 + $0x138] sm:$0xff]  ;;  %v767_v48 = vld [vmem:[#allocation11 + $0x170] sm:$0xff] }
 0x156   : > { %v2756_v44 = vpack.c.bf16 %v761_v42, %v758_v41  ;;  %v757_v45 = vld [vmem:[#allocation11 + $0x120] sm:$0xff]  ;;  %v764_v47 = vld [vmem:[#allocation11 + $0x158] sm:$0xff]  ;;  %v763_v51 = vld [vmem:[#allocation11 + $0x150] sm:$0xff]  ;;  %v4109_v16 = vshrl.u32 %v655_v15, 7 }
 0x157   : > { %2743 = vmatpush1.bf16.msra.mxu0 %v2742_v20  ;;  %667 = vrot.lane.b32.xlu1 %v4083_v32, %s3563_s27  ;;  %v2758_v49 = vpack.c.bf16 %v760_v46, %v757_v45  ;;  %v2760_v50 = vpack.c.bf16 %v767_v48, %v764_v47  ;;  %v766_v52 = vld [vmem:[#allocation11 + $0x168] sm:$0xff]  ;;  %v723_v55 = vld [vmem:[#allocation11 + $0x10] sm:$0xff]  ;;  %v729_v57 = vld [vmem:[#allocation11 + $0x40] sm:$0xff] }
 0x158   : > { %2745 = vmatprep.subr.bf16.mxu0 %v2744_v21  ;;  %697 = vrot.lane.b32.xlu0 %v4086_v35, %s3563_s27  ;;  %v2762_v53 = vpack.c.bf16 %v766_v52, %v763_v51  ;;  %v660_v54 = vld [vmem:[%s567_s25 + $0x8] sm:$0xff]  ;;  %v735_v61 = vld [vmem:[#allocation11 + $0x70] sm:$0xff]  ;;  %v741_v0 = vld [vmem:[#allocation11 + $0xa0] sm:$0xff]  ;;  %v777_v17 = vsub.s32 1, %v4109_v16  ;;  %v773_v22 = vsub.s32 0, %v4109_v16 }
 0x159   : > { %v726_v56 = vld [vmem:[#allocation11 + $0x28] sm:$0xff]  ;;  %v732_v59 = vld [vmem:[#allocation11 + $0x58] sm:$0xff]  ;;  %v747_v3 = vld [vmem:[#allocation11 + $0xd0] sm:$0xff] }
 0x15a   : > { %v2764_v58 = vpack.c.bf16 %v726_v56, %v723_v55  ;;  %v2768_v60 = vpack.c.bf16 %v732_v59, %v729_v57  ;;  %v738_v62 = vld [vmem:[#allocation11 + $0x88] sm:$0xff]  ;;  %v744_v1 = vld [vmem:[#allocation11 + $0xb8] sm:$0xff]  ;;  %v753_v6 = vld [vmem:[#allocation11 + $0x100] sm:$0xff] }
 0x15b   : > { %2747 = vmatpush1.bf16.msra.mxu0 %v2746_v28  ;;  %699 = vrot.lane.b32.xlu1 %v4091_v40, %s3563_s27  ;;  %v2772_v63 = vpack.c.bf16 %v738_v62, %v735_v61  ;;  %v2776_v2 = vpack.c.bf16 %v744_v1, %v741_v0  ;;  %v750_v4 = vld [vmem:[#allocation11 + $0xe8] sm:$0xff]  ;;  %v759_v9 = vld [vmem:[#allocation11 + $0x130] sm:$0xff]  ;;  %v765_v12 = vld [vmem:[#allocation11 + $0x160] sm:$0xff] }
 0x15c   : > { %2749 = vmatprep.subr.bf16.mxu0 %v2748_v29  ;;  %703 = vrot.lane.b32.xlu0 %v4086_v35, %s3562_s24  ;;  %v2780_v5 = vpack.c.bf16 %v750_v4, %v747_v3  ;;  %v762_v10 = vld [vmem:[#allocation11 + $0x148] sm:$0xff]  ;;  %v768_v13 = vld [vmem:[#allocation11 + $0x178] sm:$0xff]  ;;  %v4115_v18 = vld [vmem:[%s4471_s22] sm:$0x7] }
 0x15d   : > { %2765 = vmatprep.subr.bf16.mxu1 %v2764_v58  ;;  %v2788_v11 = vpack.c.bf16 %v762_v10, %v759_v9  ;;  %v2792_v14 = vpack.c.bf16 %v768_v13, %v765_v12  ;;  %v778_v19 = vrot.slane %v4115_v18, %v777_v17 }
 0x15e   : > { %2767 = vmatpush3.bf16.msra.mxu1 %v2764_v58 }
 0x15f   : > { %2751 = vmatpush1.bf16.msra.mxu0 %v2750_v36  ;;  %673 = vrot.lane.b32.xlu1 %v4083_v32, %s3562_s24 }
 0x160   : > { %2753 = vmatprep.subr.bf16.mxu0 %v2752_v37  ;;  %677 = vrot.lane.b32.xlu0 %v4077_v27, %s3564_s3 }
 0x161   : > { %2769 = vmatprep.subr.bf16.mxu1 %v2768_v60 }
 0x162   : > { %2771 = vmatpush3.bf16.msra.mxu1 %v2768_v60 }
 0x163   : > { %2755 = vmatpush1.bf16.msra.mxu0 %v2754_v43  ;;  %679 = vrot.lane.b32.xlu1 %v4083_v32, %s3564_s3  ;;  %v656_v43 = vand.u32 127, %v655_v15 }
 0x164   : > { %2757 = vmatprep.subr.bf16.mxu0 %v2756_v44  ;;  %709 = vrot.lane.b32.xlu0 %v4086_v35, %s3564_s3 }
 0x165   : > { %2773 = vmatprep.subr.bf16.mxu1 %v2772_v63  ;;  %v657_v47 = vand.u32 1, %v656_v43 }
 0x166   : > { %2775 = vmatpush3.bf16.msra.mxu1 %v2772_v63 }
 0x167   : > { %2759 = vmatpush1.bf16.msra.mxu0 %v2758_v49  ;;  %2777 = vmatprep.subr.bf16.mxu1 %v2776_v2  ;;  %vm4128_vm3 = vcmp.eq.s32.totalorder %v657_v47, 1 }
 0x168   : > { %2761 = vmatprep.subr.bf16.mxu0 %v2760_v50  ;;  %705 = vrot.lane.b32.xlu0 %v4091_v40, %s3562_s24 }
 0x16a   : > { %2779 = vmatpush3.bf16.msra.mxu1 %v2776_v2 }
 0x16b   : > { %2763 = vmatpush1.bf16.msra.mxu0 %v2762_v53  ;;  %2781 = vmatprep.subr.bf16.mxu1 %v2780_v5 }
 0x16e   : > { %851 = vmatmul.mubr.f32.vlgmr.msra.gmra.mrb[0].mxu0 %v659_v26  ;;  %2783 = vmatpush3.bf16.msra.mxu1 %v2780_v5  ;;  %v774_v26 = vrot.slane %v4115_v18, %v773_v22 }
 0x16f   : > { %856 = vmatprep.mubr.f32.mxu0 %v3561_v7  ;;  %v756_v7 = vld [vmem:[#allocation11 + $0x118] sm:$0xff] }
 0x170   : > { %v2784_v8 = vpack.c.bf16 %v756_v7, %v753_v6 }
 0x172   : > { %857 = vmatmul.mubr.f32.gmra.mrb[2].mxu0 %v660_v54  ;;  %2785 = vmatprep.subr.bf16.mxu1 %v2784_v8 }
 0x173   : > { %2787 = vmatpush3.bf16.msra.mxu1 %v2784_v8 }
 0x174   : > { %2789 = vmatprep.subr.bf16.mxu1 %v2788_v11 }
 0x177   : > { %2791 = vmatpush3.bf16.msra.mxu1 %v2788_v11 }
 0x178   : > { %2793 = vmatprep.subr.bf16.mxu1 %v2792_v14 }
 0x17b   : > { %2795 = vmatpush3.bf16.msra.mxu1 %v2792_v14 }
 0x17e   : > { %2623 = vmatmul.mubr.f32.vlgmr.msra.gmra.mrb[0].mxu1 %v660_v54 }
 0x1c5   : > { %v672_v33 = vpop.permute.xlu1 %671 }
 0x1c6   : > { %v666_v31 = vpop.permute.xlu0 %665 }
 0x1c7   : > { %v684_v44 = vsel %vm683_vm0, %v4077_v27, %v666_v31 }
 0x1c8   : > { %v687_v49 = vsel %vm686_vm1, %v684_v44, %v672_v33 }
 0x1c9   : > { %v668_v36 = vpop.permute.xlu1 %667 }
 0x1ca   : > { %v698_v34 = vpop.permute.xlu0 %697  ;;  %v685_v27 = vsel %vm683_vm0, %v4083_v32, %v668_v36 }
 0x1cb   : > { %v715_v48 = vsel %vm683_vm0, %v4086_v35, %v698_v34 }
 0x1cd   : > { %v700_v38 = vpop.permute.xlu1 %699 }
 0x1ce   : > { %v704_v37 = vpop.permute.xlu0 %703  ;;  %v716_v62 = vsel %vm683_vm0, %v4091_v40, %v700_v38 }
 0x1cf   : > { %v717_v50 = vsel %vm686_vm1, %v715_v48, %v704_v37 }
 0x1d1   : > { %v674_v41 = vpop.permute.xlu1 %673 }
 0x1d2   : > { %v678_v39 = vpop.permute.xlu0 %677  ;;  %v688_v57 = vsel %vm686_vm1, %v685_v27, %v674_v41 }
 0x1d3   : > { %v690_v54 = vsel %vm689_vm2, %v687_v49, %v678_v39 }
 0x1d5   : > { %v680_v45 = vpop.permute.xlu1 %679 }
 0x1d6   : > { %v710_v42 = vpop.permute.xlu0 %709  ;;  %v691_v32 = vsel %vm689_vm2, %v688_v57, %v680_v45 }
 0x1d7   : > { %v719_v56 = vsel %vm689_vm2, %v717_v50, %v710_v42 }
 0x1da   : > { %v706_v46 = vpop.permute.xlu0 %705 }
 0x1db   : > { %v718_v1 = vsel %vm686_vm1, %v716_v62, %v706_v46 }
 0x241   : > { %v852_v20 = vpop.f32.mrb[0].mxu0 }
 0x242   : > { %v854_v21 = vpop.f32.mrb[1].mxu0  ;;  %v853_v29 = vadd.f32 %v852_v20, %v774_v26 }
 0x243   : > { %v855_v23 = vadd.f32 %v854_v21, %v778_v19 }
 0x244   : > { %v938_v12 = vmul.f32 %v853_v29, %v690_v54 }
 0x245   : > { %v858_v24 = vpop.f32.mrb[2].mxu0  ;;  %964 = vrot.lane.b32.xlu0 %v855_v23, %s3565_s26  ;;  %960 = vrot.lane.b32.xlu1 %v855_v23, %s3566_s19  ;;  %v958_v60 = vmul.f32 %v855_v23, %v690_v54 }
 0x246   : > { %v860_v25 = vpop.f32.mrb[3].mxu0  ;;  %v859_v30 = vadd.f32 %v858_v24, %v774_v26 }
 0x247   : > { %v861_v28 = vadd.f32 %v860_v25, %v778_v19  ;;  %v781_v25 = vsub.s32 2, %v4109_v16 }
 0x248   : > { %v939_v20 = vmul.f32 %v859_v30, %v691_v32 }
 0x249   : > { %711 = vrot.lane.b32.xlu0 %v4091_v40, %s3564_s3  ;;  %962 = vrot.lane.b32.xlu1 %v861_v28, %s3566_s19  ;;  %v959_v6 = vmul.f32 %v861_v28, %v691_v32 }
 0x24d   : > { %966 = vrot.lane.b32.xlu1 %v861_v28, %s3565_s26  ;;  %940 = vrot.lane.b32.xlu0 %v853_v29, %s3566_s19  ;;  %v782_v28 = vrot.slane %v4115_v18, %v781_v25 }
 0x251   : > { %942 = vrot.lane.b32.xlu1 %v859_v30, %s3566_s19  ;;  %944 = vrot.lane.b32.xlu0 %v853_v29, %s3565_s26  ;;  %v2624_v26 = vpop.f32.mrb[0].mxu1 }
 0x252   : > { %v935_v29 = vadd.f32 %v2624_v26, %v782_v28  ;;  %v929_v31 = vpop.f32.mrb[1].mxu1 }
 0x253   : > { %v930_v33 = vadd.f32 %v929_v31, %v782_v28 }
 0x254   : > { %1030 = vst [vmem:[#allocation4 + $0x8] sm:$0xff] %v935_v29 }
 0x255   : > { %946 = vrot.lane.b32.xlu1 %v859_v30, %s3565_s26  ;;  %1029 = vst [vmem:[#allocation4] sm:$0xff] %v930_v33 }
 0x2b7   : > { %v965_v51 = vpop.permute.xlu0 %964  ;;  %v961_v52 = vpop.permute.xlu1 %960 }
 0x2b8   : > { %v968_v55 = vsub.f32 0.0, %v961_v52 }
 0x2ba   : > { %v970_v35 = vsel %vm4128_vm3, %v965_v51, %v968_v55 }
 0x2bb   : > { %v712_v58 = vpop.permute.xlu0 %711  ;;  %v963_v59 = vpop.permute.xlu1 %962  ;;  %v972_v61 = vmul.f32 %v970_v35, %v719_v56 }
 0x2bc   : > { %v969_v0 = vsub.f32 0.0, %v963_v59  ;;  %v720_v4 = vsel %vm689_vm2, %v718_v1, %v712_v58 }
 0x2bd   : > { %v974_v63 = vadd.f32 %v972_v61, %v958_v60 }
 0x2bf   : > { %v967_v2 = vpop.permute.xlu1 %966  ;;  %v941_v3 = vpop.permute.xlu0 %940  ;;  %980 = vxpose.xlu0.b32.start [1/2] (short) %v974_v63, 128 }
 0x2c0   : > { %v971_v5 = vsel %vm4128_vm3, %v967_v2, %v969_v0  ;;  %v948_v8 = vsub.f32 0.0, %v941_v3 }
 0x2c1   : > { %v973_v7 = vmul.f32 %v971_v5, %v720_v4 }
 0x2c3   : > { %v943_v9 = vpop.permute.xlu1 %942  ;;  %v945_v10 = vpop.permute.xlu0 %944  ;;  %v975_v40 = vadd.f32 %v973_v7, %v959_v6 }
 0x2c4   : > { %v952_v11 = vsel %vm4128_vm3, %v945_v10, %v948_v8  ;;  %v949_v14 = vsub.f32 0.0, %v943_v9 }
 0x2c5   : > { %v954_v13 = vmul.f32 %v952_v11, %v719_v56  ;;  %981 = vxpose.xlu0.b32.end [2/2] (short) %v975_v40, 128 }
 0x2c7   : > { %v956_v15 = vadd.f32 %v954_v13, %v938_v12  ;;  %v947_v17 = vpop.permute.xlu1 %946 }
 0x2c8   : > { %v953_v19 = vsel %vm4128_vm3, %v947_v17, %v949_v14 }
 0x2c9   : > { %v976_v21 = vmul.f32 0.17677669, %v956_v15  ;;  %v955_v22 = vmul.f32 %v953_v19, %v720_v4 }
 0x2cb   : > { %978 = vst [vmem:[#allocation2] sm:$0xff] %v976_v21  ;;  %v957_v23 = vadd.f32 %v955_v22, %v939_v20 }
 0x2cd   : > { %v977_v24 = vmul.f32 0.17677669, %v957_v23 }
 0x2cf   : > { %979 = vst [vmem:[#allocation2 + $0x8] sm:$0xff] %v977_v24 }
 0x341   : > { %v996_v34 = vpop.trf.xlu0 }
 0x342   : > { %1013 = vst.msk [vmem:[#allocation3] sm:$0xff] %vm1012_vm4, %v996_v34 }
 0x345   : > { %v997_v30 = vpop.trf.xlu0 }
 0x346   : > { %1014 = vst.msk [vmem:[#allocation3 + $0x8] sm:$0xff] %vm1012_vm4, %v997_v30 }
 0x349   : > { %v998_v36 = vpop.trf.xlu0 }
 0x34a   : > { %1015 = vst.msk [vmem:[#allocation3 + $0x10] sm:$0xff] %vm1012_vm4, %v998_v36 }
 0x34d   : > { %v999_v37 = vpop.trf.xlu0 }
 0x34e   : > { %1016 = vst.msk [vmem:[#allocation3 + $0x18] sm:$0xff] %vm1012_vm4, %v999_v37 }
 0x351   : > { %v1000_v16 = vpop.trf.xlu0 }
 0x352   : > { %1017 = vst.msk [vmem:[#allocation3 + $0x20] sm:$0xff] %vm1012_vm4, %v1000_v16 }
 0x355   : > { %v1001_v18 = vpop.trf.xlu0 }
 0x356   : > { %1018 = vst.msk [vmem:[#allocation3 + $0x28] sm:$0xff] %vm1012_vm4, %v1001_v18 }
 0x359   : > { %v1002_v38 = vpop.trf.xlu0 }
 0x35a   : > { %1019 = vst.msk [vmem:[#allocation3 + $0x30] sm:$0xff] %vm1012_vm4, %v1002_v38 }
 0x35d   : > { %v1003_v39 = vpop.trf.xlu0 }
 0x35e   : > { %1020 = vst.msk [vmem:[#allocation3 + $0x38] sm:$0xff] %vm1012_vm4, %v1003_v39 }
 0x361   : > { %v1004_v41 = vpop.trf.xlu0 }
 0x362   : > { %1021 = vst.msk [vmem:[#allocation3 + $0x40] sm:$0xff] %vm1012_vm4, %v1004_v41 }
 0x365   : > { %v1005_v42 = vpop.trf.xlu0 }
 0x366   : > { %1022 = vst.msk [vmem:[#allocation3 + $0x48] sm:$0xff] %vm1012_vm4, %v1005_v42 }
 0x369   : > { %v1006_v43 = vpop.trf.xlu0 }
 0x36a   : > { %1023 = vst.msk [vmem:[#allocation3 + $0x50] sm:$0xff] %vm1012_vm4, %v1006_v43 }
 0x36d   : > { %v1007_v44 = vpop.trf.xlu0 }
 0x36e   : > { %1024 = vst.msk [vmem:[#allocation3 + $0x58] sm:$0xff] %vm1012_vm4, %v1007_v44 }
 0x371   : > { %v1008_v45 = vpop.trf.xlu0 }
 0x372   : > { %1025 = vst.msk [vmem:[#allocation3 + $0x60] sm:$0xff] %vm1012_vm4, %v1008_v45 }
 0x375   : > { %v1009_v46 = vpop.trf.xlu0 }
 0x376   : > { %1026 = vst.msk [vmem:[#allocation3 + $0x68] sm:$0xff] %vm1012_vm4, %v1009_v46 }
 0x379   : > { %v1010_v47 = vpop.trf.xlu0 }
 0x37a   : > { %1027 = vst.msk [vmem:[#allocation3 + $0x70] sm:$0xff] %vm1012_vm4, %v1010_v47 }
 0x37d   : > { %v1011_v48 = vpop.trf.xlu0 }
 0x37e   : > { %1028 = vst.msk [vmem:[#allocation3 + $0x78] sm:$0xff] %vm1012_vm4, %v1011_v48 }
 0x37f PF: > { %v1035_v49 = vld [vmem:[#allocation3] sm:$0xff]  ;;  %s4474_s14 = sld [smem:[#allocation27_spill]]  ;;  %v1036_v50 = vld [vmem:[#allocation3 + $0x8] sm:$0xff]  ;;  %v1037_v51 = vld [vmem:[#allocation3 + $0x10] sm:$0xff]  ;;  %v3567_v52 = vmov 0.0|0.0   ;;  %vm3568_vm5 = vmmov 0  }
 0x380   : > { %2796 = vmatprep.subr.bf16.mxu0 %v3567_v52  ;;  %v2797_v53 = vpack.c.bf16 %v1036_v50, %v1035_v49  ;;  %v1038_v27 = vld [vmem:[#allocation3 + $0x18] sm:$0xff]  ;;  %v3569_v54 = vmov 0.0   ;;  %2802 = vmatprep.subr.bf16.mxu1 %v3567_v52  ;;  %vm1041_vm6 = vcmask 261120   ;;  %vm1115_vm7 = vcmask 130048   ;;  %v1039_v59 = vld [vmem:[#allocation4] sm:$0xff]  ;;  %v1040_v60 = vld [vmem:[#allocation4 + $0x8] sm:$0xff] }
 0x381   : > { %2633 = vmatprep.mubr.msk.f32.mxu0 %vm3568_vm5, %v3569_v54  ;;  %2640 = vmatprep.mubr.msk.f32.mxu1 %vm3568_vm5, %v3569_v54  ;;  %v2800_v55 = vpack.c.bf16 %v1038_v27, %v1037_v51  ;;  %v2803_v61 = vpack.c.bf16 %v1040_v60, %v1039_v59  ;;  %s3570_s28 = smov 96   ;;  %v4187_v62 = vpack.i.bf16 %v1040_v60, %v1039_v59  ;;  %v1200_v1 = vld [vmem:[#allocation3 + $0x20] sm:$0xff]  ;;  %v1201_v2 = vld [vmem:[#allocation3 + $0x28] sm:$0xff]  ;;  %v1202_v4 = vld [vmem:[#allocation3 + $0x30] sm:$0xff]  ;;  %s3571_s11 = smov 64   ;;  %vm1719_vm8 = vcmask 523264  }
 0x382   : > { %2798 = vmatpush3.bf16.msra.mxu0 %v2797_v53  ;;  %v2806_v3 = vpack.c.bf16 %v1201_v2, %v1200_v1  ;;  %v1203_v5 = vld [vmem:[#allocation3 + $0x38] sm:$0xff]  ;;  %v1370_v22 = vld [vmem:[#allocation3 + $0x40] sm:$0xff]  ;;  %v1371_v23 = vld [vmem:[#allocation3 + $0x48] sm:$0xff]  ;;  %s3572_s25 = smov 32   ;;  %vm1721_vm9 = vcmask 785408   ;;  %s4475_s29 = sld [smem:[#allocation41_spill]] }
 0x383   : > { %2799 = vmatprep.subr.bf16.mxu0 %v3567_v52  ;;  %2804 = vmatpush3.bf16.msra.mxu1 %v2803_v61  ;;  %v2809_v7 = vpack.c.bf16 %v1203_v5, %v1202_v4  ;;  %v2815_v24 = vpack.c.bf16 %v1371_v23, %v1370_v22  ;;  %v1372_v25 = vld [vmem:[#allocation3 + $0x50] sm:$0xff]  ;;  %v1373_v26 = vld [vmem:[#allocation3 + $0x58] sm:$0xff]  ;;  %v1538_v44 = vld [vmem:[#allocation3 + $0x60] sm:$0xff]  ;;  %s4476_s3 = sld [smem:[#allocation44_spill]]  ;;  %s4477_s0 = sld [smem:[#allocation45_spill]] }
 0x384   : > { %2805 = vmatprep.subr.bf16.mxu1 %v3567_v52  ;;  %3137 = vrot.lane.b32.xlu1 %v4187_v62, %s3570_s28  ;;  %v2818_v29 = vpack.c.bf16 %v1373_v26, %v1372_v25  ;;  %v1539_v45 = vld [vmem:[#allocation3 + $0x68] sm:$0xff]  ;;  %v1540_v47 = vld [vmem:[#allocation3 + $0x70] sm:$0xff]  ;;  %v1730_v22 = vld [vmem:[#allocation13 + $0x38] sm:$0xff]  ;;  %s4478_s19 = sld [smem:[#allocation46_spill]]  ;;  %s4480_s8 = sld [smem:[#allocation48_spill]] }
 0x385   : > { %s2470_s13 = sshll.u32 %s4474_s14, 3  ;;  %v2824_v46 = vpack.c.bf16 %v1539_v45, %v1538_v44  ;;  %v1541_v48 = vld [vmem:[#allocation3 + $0x78] sm:$0xff]  ;;  %v1732_v25 = vld [vmem:[#allocation13 + $0x48] sm:$0xff]  ;;  %p4482_p3 = scmp.ne.s32.totalorder %s4448_s2, 0 }
 0x386   : > { %2801 = vmatpush3.bf16.msra.mxu0 %v2800_v55  ;;  %s1032_s12 = scalar_lea.vmem [#allocation2], %s2470_s13  ;;  %v2827_v50 = vpack.c.bf16 %v1541_v48, %v1540_v47  ;;  %v1853_v44 = vld [vmem:[#allocation16 + $0x28] sm:$0xff]  ;;  %v1855_v45 = vld [vmem:[#allocation16 + $0x38] sm:$0xff]  ;;  %v1852_v48 = vld [vmem:[#allocation16 + $0x20] sm:$0xff]  ;;  %s4479_s13 = sld [smem:[#allocation28_spill]] }
 0x387   : > { %v4176_v56 = vld [vmem:[%s1032_s12] sm:$0xff]  ;;  %2811 = vmatprep.subr.bf16.mxu0 %v3567_v52  ;;  %v2860_v47 = vpack.c.bf16 %v1855_v45, %v1853_v44  ;;  %v1823_v44 = vld [vmem:[#allocation14 + $0x38] sm:$0xff] }
 0x389   : > { %2634 = vmatmul.mubr.msk.f32.vlgmr.msra.gmra.mrb[0].mxu0 %vm1041_vm6, %v4176_v56 }
 0x38a   : > { %2658 = vmatprep.mubr.msk.f32.mxu0 %vm3568_vm5, %v3569_v54 }
 0x38c   : > { %s2482_s12 = sshll.u32 %s4479_s13, 1 }
 0x3f6   : > { %v3138_v9 = vpop.permute.xlu1 %3137 }
 0x3f7   : > { %v3140_v10 = vunpack.i.h.bf16 %v3138_v9  ;;  %v3139_v40 = vunpack.i.l.bf16 %v3138_v9 }
 0x3f9   : > { %v2812_v11 = vpack.c.bf16 %v3140_v10, %v3139_v40  ;;  %v1723_v40 = vld [vmem:[#allocation13] sm:$0xff] }
 0x3fb   : > { %2813 = vmatpush3.bf16.msra.mxu0 %v2812_v11  ;;  %v1724_v11 = vld [vmem:[#allocation13 + $0x8] sm:$0xff] }
 0x3fc   : > { %2814 = vmatprep.subr.bf16.mxu0 %v3567_v52 }
 0x45c   : > { %v1111_v35 = vpop.f32.mrb[0].mxu0 }
 0x45d   : > { %v2635_v57 = vpop.f32.mrb[1].mxu0  ;;  %v1116_v58 = vsel %vm1115_vm7, %v1111_v35, -inf }
 0x45e   : > { %1117 = vmax.xlane.f32.xlu0 %v1116_v58 }
 0x474   : > { %1204 = vrot.lane.b32.xlu0 %v4176_v56, %s3570_s28 }
 0x478   : > { %3142 = vrot.lane.b32.xlu0 %v4187_v62, %s3571_s11 }
 0x47c   : > { %1542 = vrot.lane.b32.xlu0 %v4176_v56, %s3572_s25 }
 0x4eb   : > { %v1118_v63 = vpop.xlane.xlu0 %1117 }
 0x4ec   : > { %v1119_v32 = vsub.f32 %v1111_v35, %v1118_v63 }
 0x4ee   : > { %v1120_v0 = vmul.f32 1.442695, %v1119_v32 }
 0x4ef   : > { %v1205_v8 = vpop.permute.xlu0 %1204 }
 0x4f0   : > { %3151 = vpow2.f32 %v1120_v0 }
 0x4f3   : > { %v3143_v16 = vpop.permute.xlu0 %3142 }
 0x4f4   : > { %v3145_v18 = vunpack.i.h.bf16 %v3143_v16  ;;  %v3144_v38 = vunpack.i.l.bf16 %v3143_v16 }
 0x4f6   : > { %v2821_v39 = vpack.c.bf16 %v3145_v18, %v3144_v38  ;;  %v1849_v38 = vld [vmem:[#allocation16 + $0x8] sm:$0xff] }
 0x4f7   : > { %v1543_v51 = vpop.permute.xlu0 %1542 }
 0x4fa   : > { %v4191_v6 = vpop.eup %3151 }
 0x4fb   : > { %2641 = vmatmul.mubr.msk.f32.vlgmr.msra.gmra.mrb[0].mxu1 %vm1115_vm7, %v4191_v6 }
 0x4fc   : > { %2807 = vmatpush3.bf16.msra.mxu1 %v2806_v3  ;;  %2651 = vmatprep.mubr.msk.f32.mxu1 %vm3568_vm5, %v3569_v54 }
 0x4fd   : > { %2808 = vmatprep.subr.bf16.mxu1 %v3567_v52 }
 0x500   : > { %2810 = vmatpush3.bf16.msra.mxu1 %v2809_v7  ;;  %v1122_v7 = vsel %vm1115_vm7, %v4191_v6, 0.0 }
 0x501   : > { %2820 = vmatprep.subr.bf16.mxu1 %v3567_v52 }
 0x503   : > { %2652 = vmatmul.mubr.msk.f32.vlgmr.msra.gmra.mrb[2].mxu1 %vm1041_vm6, %v1205_v8 }
 0x504   : > { %2676 = vmatprep.mubr.msk.f32.mxu1 %vm3568_vm5, %v3569_v54  ;;  %2822 = vmatpush3.bf16.msra.mxu1 %v2821_v39  ;;  %v1851_v39 = vld [vmem:[#allocation16 + $0x18] sm:$0xff] }
 0x505   : > { %2823 = vmatprep.subr.bf16.mxu1 %v3567_v52 }
 0x5ce   : > { %v4203_v12 = vpop.f32.mrb[0].mxu1 }
 0x5cf   : > { %v2642_v13 = vpop.f32.mrb[1].mxu1 }
 0x5d0   : > { %v1725_v13 = vld [vmem:[#allocation13 + $0x10] sm:$0xff] }
 0x5d6   : > { %v1274_v14 = vpop.f32.mrb[2].mxu1 }
 0x5d7   : > { %v2653_v15 = vpop.f32.mrb[3].mxu1  ;;  %v1278_v17 = vsel %vm1115_vm7, %v1274_v14, -inf }
 0x5d8   : > { %1279 = vmax.xlane.f32.xlu1 %v1278_v17  ;;  %v1726_v15 = vld [vmem:[#allocation13 + $0x18] sm:$0xff] }
 0x5d9   : > { %v2836_v17 = vpack.c.bf16 %v1726_v15, %v1725_v13  ;;  %v1873_v13 = vld [vmem:[#allocation16 + $0xc8] sm:$0xff] }
 0x5e9   : > { %1374 = vrot.lane.b32.xlu1 %v4176_v56, %s3571_s11 }
 0x665   : > { %v1280_v19 = vpop.xlane.xlu1 %1279 }
 0x666   : > { %v1281_v20 = vsub.f32 %v1274_v14, %v1280_v19  ;;  %v2833_v14 = vpack.c.bf16 %v1724_v11, %v1723_v40  ;;  %v1727_v19 = vld [vmem:[#allocation13 + $0x20] sm:$0xff]  ;;  %v1870_v11 = vld [vmem:[#allocation16 + $0xb0] sm:$0xff] }
 0x667   : > { %v1868_v40 = vld [vmem:[#allocation16 + $0xa0] sm:$0xff] }
 0x668   : > { %v1282_v21 = vmul.f32 1.442695, %v1281_v20  ;;  %v1728_v20 = vld [vmem:[#allocation13 + $0x28] sm:$0xff]  ;;  %v2878_v15 = vpack.c.bf16 %v1870_v11, %v1868_v40  ;;  %v1843_v40 = vld [vmem:[#allocation14 + $0xd8] sm:$0xff] }
 0x669   : > { %v1375_v31 = vpop.permute.xlu1 %1374  ;;  %v2839_v6 = vpack.c.bf16 %v1728_v20, %v1727_v19  ;;  %v1872_v19 = vld [vmem:[#allocation16 + $0xc0] sm:$0xff]  ;;  %v1874_v20 = vld [vmem:[#allocation16 + $0xd0] sm:$0xff] }
 0x66a   : > { %3153 = vpow2.f32 %v1282_v21  ;;  %v1729_v21 = vld [vmem:[#allocation13 + $0x30] sm:$0xff] }
 0x66b   : > { %v2842_v23 = vpack.c.bf16 %v1730_v22, %v1729_v21  ;;  %v1879_v21 = vld [vmem:[#allocation16 + $0xf8] sm:$0xff]  ;;  %v2882_v22 = vpack.c.bf16 %v1874_v20, %v1872_v19 }
 0x66c   : > { %v1847_v19 = vld [vmem:[#allocation14 + $0xf8] sm:$0xff] }
 0x674   : > { %v3154_v28 = vpop.eup %3153 }
 0x675   : > { %2659 = vmatmul.mubr.msk.f32.vlgmr.msra.gmra.mrb[2].mxu0 %vm1115_vm7, %v3154_v28  ;;  %v1284_v57 = vsel %vm1115_vm7, %v3154_v28, 0.0  ;;  %v1733_v28 = vld [vmem:[#allocation13 + $0x50] sm:$0xff] }
 0x676   : > { %2816 = vmatpush3.bf16.msra.mxu0 %v2815_v24  ;;  %2669 = vmatprep.mubr.msk.f32.mxu0 %vm3568_vm5, %v3569_v54  ;;  %v1731_v24 = vld [vmem:[#allocation13 + $0x40] sm:$0xff] }
 0x677   : > { %2817 = vmatprep.subr.bf16.mxu0 %v3567_v52  ;;  %v2845_v26 = vpack.c.bf16 %v1732_v25, %v1731_v24  ;;  %v1876_v24 = vld [vmem:[#allocation16 + $0xe0] sm:$0xff]  ;;  %v1878_v25 = vld [vmem:[#allocation16 + $0xf0] sm:$0xff] }
 0x67a   : > { %2819 = vmatpush3.bf16.msra.mxu0 %v2818_v29  ;;  %v1734_v29 = vld [vmem:[#allocation13 + $0x58] sm:$0xff] }
 0x67b   : > { %2829 = vmatprep.subr.bf16.mxu0 %v3567_v52 }
 0x67d   : > { %2670 = vmatmul.mubr.msk.f32.vlgmr.msra.gmra.mrb[4].mxu0 %vm1041_vm6, %v1375_v31  ;;  %v2848_v31 = vpack.c.bf16 %v1734_v29, %v1733_v28 }
 0x67e   : > { %2694 = vmatprep.mubr.msk.f32.mxu0 %vm3568_vm5, %v3569_v54 }
 0x748   : > { %v1365_v33 = vpop.f32.mrb[2].mxu0 }
 0x749   : > { %v2660_v34 = vpop.f32.mrb[3].mxu0 }
 0x74a   : > { %v1736_v34 = vld [vmem:[#allocation13 + $0x68] sm:$0xff] }
 0x750   : > { %v1444_v30 = vpop.f32.mrb[4].mxu0 }
 0x751   : > { %v2671_v36 = vpop.f32.mrb[5].mxu0  ;;  %v1448_v37 = vsel %vm1115_vm7, %v1444_v30, -inf }
 0x752   : > { %1449 = vmax.xlane.f32.xlu1 %v1448_v37  ;;  %v1737_v36 = vld [vmem:[#allocation13 + $0x70] sm:$0xff]  ;;  %v1738_v37 = vld [vmem:[#allocation13 + $0x78] sm:$0xff] }
 0x753   : > { %v2854_v16 = vpack.c.bf16 %v1738_v37, %v1737_v36 }
 0x763   : > { %3147 = vrot.lane.b32.xlu1 %v4187_v62, %s3572_s25 }
 0x7df   : > { %v1450_v41 = vpop.xlane.xlu1 %1449 }
 0x7e0   : > { %v1451_v42 = vsub.f32 %v1444_v30, %v1450_v41  ;;  %v1848_v41 = vld [vmem:[#allocation16] sm:$0xff] }
 0x7e2   : > { %v1452_v43 = vmul.f32 1.442695, %v1451_v42  ;;  %v2856_v42 = vpack.c.bf16 %v1851_v39, %v1849_v38  ;;  %v1819_v38 = vld [vmem:[#allocation14 + $0x18] sm:$0xff] }
 0x7e3   : > { %v3148_v59 = vpop.permute.xlu1 %3147 }
 0x7e4   : > { %3155 = vpow2.f32 %v1452_v43  ;;  %v3150_v60 = vunpack.i.h.bf16 %v3148_v59  ;;  %v3149_v61 = vunpack.i.l.bf16 %v3148_v59  ;;  %v1850_v43 = vld [vmem:[#allocation16 + $0x10] sm:$0xff] }
 0x7e6   : > { %v2830_v63 = vpack.c.bf16 %v3150_v60, %v3149_v61  ;;  %v1860_v61 = vld [vmem:[#allocation16 + $0x60] sm:$0xff] }
 0x7e8   : > { %2831 = vmatpush3.bf16.msra.mxu0 %v2830_v63  ;;  %v1862_v63 = vld [vmem:[#allocation16 + $0x70] sm:$0xff] }
 0x7e9   : > { %2832 = vmatprep.subr.bf16.mxu0 %v3567_v52 }
 0x7ee   : > { %v3156_v49 = vpop.eup %3155 }
 0x7ef   : > { %2677 = vmatmul.mubr.msk.f32.vlgmr.msra.gmra.mrb[4].mxu1 %vm1115_vm7, %v3156_v49  ;;  %v1454_v58 = vsel %vm1115_vm7, %v3156_v49, 0.0  ;;  %v1854_v49 = vld [vmem:[#allocation16 + $0x30] sm:$0xff] }
 0x7f0   : > { %2825 = vmatpush3.bf16.msra.mxu1 %v2824_v46  ;;  %2687 = vmatprep.mubr.msk.f32.mxu1 %vm3568_vm5, %v3569_v54  ;;  %v2858_v46 = vpack.c.bf16 %v1850_v43, %v1848_v41  ;;  %v1816_v41 = vld [vmem:[#allocation14] sm:$0xff]  ;;  %v1821_v43 = vld [vmem:[#allocation14 + $0x28] sm:$0xff] }
 0x7f1   : > { %2826 = vmatprep.subr.bf16.mxu1 %v3567_v52 }
 0x7f4   : > { %2828 = vmatpush3.bf16.msra.mxu1 %v2827_v50  ;;  %v1857_v50 = vld [vmem:[#allocation16 + $0x48] sm:$0xff] }
 0x7f5   : > { %2857 = vmatprep.subr.bf16.mxu1 %v2856_v42  ;;  %v1818_v42 = vld [vmem:[#allocation14 + $0x10] sm:$0xff] }
 0x7f7   : > { %2688 = vmatmul.mubr.msk.f32.vlgmr.msra.gmra.mrb[6].mxu1 %vm1041_vm6, %v1543_v51  ;;  %v1859_v51 = vld [vmem:[#allocation16 + $0x58] sm:$0xff] }
 0x7f8   : > { %1944 = vmatprep.mubr.f32.mxu1 %v3569_v54  ;;  %2859 = vmatpush1.bf16.msra.mxu1 %v2858_v46  ;;  %v2890_v46 = vpack.c.bf16 %v1818_v42, %v1816_v41 }
 0x7f9   : > { %2861 = vmatprep.subr.bf16.mxu1 %v2860_v47 }
 0x8c2   : > { %v1533_v53 = vpop.f32.mrb[4].mxu1 }
 0x8c3   : > { %v2678_v27 = vpop.f32.mrb[5].mxu1 }
 0x8c4   : > { %v1856_v27 = vld [vmem:[#allocation16 + $0x40] sm:$0xff] }
 0x8ca   : > { %v1612_v55 = vpop.f32.mrb[6].mxu1 }
 0x8cb   : > { %v2689_v56 = vpop.f32.mrb[7].mxu1  ;;  %v1616_v35 = vsel %vm1115_vm7, %v1612_v55, -inf }
 0x8cc   : > { %1617 = vmax.xlane.f32.xlu0 %v1616_v35  ;;  %v1861_v56 = vld [vmem:[#allocation16 + $0x68] sm:$0xff]  ;;  %v1863_v35 = vld [vmem:[#allocation16 + $0x78] sm:$0xff] }
 0x8cd   : > { %v2868_v60 = vpack.c.bf16 %v1863_v35, %v1861_v56  ;;  %v1824_v56 = vld [vmem:[#allocation14 + $0x40] sm:$0xff]  ;;  %v1826_v35 = vld [vmem:[#allocation14 + $0x50] sm:$0xff] }
 0x8d0   : > { %1285 = vadd.xlane.f32.xlu0 %v1284_v57 }
 0x8d4   : > { %1455 = vadd.xlane.f32.xlu0 %v1454_v58 }
 0x959   : > { %v1618_v62 = vpop.xlane.xlu0 %1617 }
 0x95a   : > { %v1619_v32 = vsub.f32 %v1612_v55, %v1618_v62  ;;  %v1858_v55 = vld [vmem:[#allocation16 + $0x50] sm:$0xff] }
 0x95b   : > { %v2866_v57 = vpack.c.bf16 %v1858_v55, %v1856_v27 }
 0x95c   : > { %v1620_v0 = vmul.f32 1.442695, %v1619_v32 }
 0x95d   : > { %v1286_v1 = vpop.xlane.xlu0 %1285 }
 0x95e   : > { %3157 = vpow2.f32 %v1620_v0  ;;  %v1865_v0 = vld [vmem:[#allocation16 + $0x88] sm:$0xff] }
 0x95f   : > { %3159 = vrcp.f32 %v1286_v1  ;;  %v1867_v1 = vld [vmem:[#allocation16 + $0x98] sm:$0xff] }
 0x961   : > { %v1456_v8 = vpop.xlane.xlu0 %1455 }
 0x962   : > { %3161 = vrcp.f32 %v1456_v8  ;;  %v1871_v8 = vld [vmem:[#allocation16 + $0xb8] sm:$0xff] }
 0x968   : > { %v3158_v2 = vpop.eup %3157 }
 0x969   : > { %v3160_v3 = vpop.eup %3159  ;;  %2695 = vmatmul.mubr.msk.f32.vlgmr.msra.gmra.mrb[6].mxu0 %vm1115_vm7, %v3158_v2  ;;  %v1622_v4 = vsel %vm1115_vm7, %v3158_v2, 0.0  ;;  %v2870_v2 = vpack.c.bf16 %v1862_v63, %v1860_v61  ;;  %v1828_v61 = vld [vmem:[#allocation14 + $0x60] sm:$0xff]  ;;  %v1830_v63 = vld [vmem:[#allocation14 + $0x70] sm:$0xff] }
 0x96a   : > { %1623 = vadd.xlane.f32.xlu0 %v1622_v4  ;;  %v1369_v5 = vmul.f32 %v3160_v3, %v1365_v33  ;;  %2729 = vmatprep.mubr.msk.f32.mxu0 %vm3568_vm5, %v3569_v54  ;;  %v1735_v33 = vld [vmem:[#allocation13 + $0x60] sm:$0xff]  ;;  %v2872_v3 = vpack.c.bf16 %v1867_v1, %v1865_v0  ;;  %v2902_v0 = vpack.c.bf16 %v1830_v63, %v1828_v61  ;;  %v2155_v61 = vld [vmem:[#allocation17 + $0xb0] sm:$0xff]  ;;  %v2156_v63 = vld [vmem:[#allocation17 + $0xb8] sm:$0xff] }
 0x96b   : > { %2834 = vmatpush3.bf16.msra.mxu0 %v2833_v14  ;;  %v2851_v30 = vpack.c.bf16 %v1736_v34, %v1735_v33  ;;  %v1864_v4 = vld [vmem:[#allocation16 + $0x80] sm:$0xff]  ;;  %v1875_v14 = vld [vmem:[#allocation16 + $0xd8] sm:$0xff] }
 0x96c   : > { %1707 = vrot.lane.b32.xlu1 %v1369_v5, %s3572_s25  ;;  %v3162_v9 = vpop.eup %3161  ;;  %2835 = vmatprep.subr.bf16.mxu0 %v3567_v52  ;;  %v1866_v5 = vld [vmem:[#allocation16 + $0x90] sm:$0xff] }
 0x96d   : > { %v1537_v10 = vmul.f32 %v3162_v9, %v1533_v53  ;;  %v2862_v53 = vpack.c.bf16 %v1854_v49, %v1852_v48  ;;  %v2874_v9 = vpack.c.bf16 %v1866_v5, %v1864_v4  ;;  %v2892_v49 = vpack.c.bf16 %v1823_v44, %v1821_v43  ;;  %v1839_v4 = vld [vmem:[#allocation14 + $0xb8] sm:$0xff] }
 0x96e   : > { %1123 = vadd.xlane.f32.xlu0 %v1122_v7  ;;  %v1869_v7 = vld [vmem:[#allocation16 + $0xa8] sm:$0xff] }
 0x96f   : > { %2837 = vmatpush3.bf16.msra.mxu0 %v2836_v17  ;;  %2863 = vmatpush1.bf16.msra.mxu1 %v2862_v53  ;;  %v2880_v17 = vpack.c.bf16 %v1875_v14, %v1873_v13  ;;  %v1825_v53 = vld [vmem:[#allocation14 + $0x48] sm:$0xff]  ;;  %v1840_v14 = vld [vmem:[#allocation14 + $0xc0] sm:$0xff] }
 0x970   : > { %2838 = vmatprep.subr.bf16.mxu0 %v3567_v52 }
 0x973   : > { %2840 = vmatpush3.bf16.msra.mxu0 %v2839_v6  ;;  %v1877_v6 = vld [vmem:[#allocation16 + $0xe8] sm:$0xff] }
 0x974   : > { %2841 = vmatprep.subr.bf16.mxu0 %v3567_v52 }
 0x977   : > { %2843 = vmatpush3.bf16.msra.mxu0 %v2842_v23  ;;  %v2884_v23 = vpack.c.bf16 %v1879_v21, %v1877_v6  ;;  %v1844_v21 = vld [vmem:[#allocation14 + $0xe0] sm:$0xff] }
 0x978   : > { %2844 = vmatprep.subr.bf16.mxu0 %v3567_v52 }
 0x97b   : > { %2846 = vmatpush3.bf16.msra.mxu0 %v2845_v26  ;;  %v2886_v26 = vpack.c.bf16 %v1878_v25, %v1876_v24  ;;  %v4257_v24 = vld [vmem:[%s4041_s20] sm:$0xff]  ;;  %v2024_v25 = vlaneseq }
 0x97c   : > { %2847 = vmatprep.subr.bf16.mxu0 %v3567_v52 }
 0x97f   : > { %2849 = vmatpush3.bf16.msra.mxu0 %v2848_v31 }
 0x980   : > { %2850 = vmatprep.subr.bf16.mxu0 %v3567_v52 }
 0x983   : > { %2852 = vmatpush3.bf16.msra.mxu0 %v2851_v30 }
 0x984   : > { %1711 = vrot.lane.b32.xlu0 %v1537_v10, %s3571_s11  ;;  %2853 = vmatprep.subr.bf16.mxu0 %v3567_v52  ;;  %v2864_v52 = vpack.c.bf16 %v1859_v51, %v1857_v50  ;;  %v2876_v10 = vpack.c.bf16 %v1871_v8, %v1869_v7  ;;  %v1820_v50 = vld [vmem:[#allocation14 + $0x20] sm:$0xff]  ;;  %v1822_v51 = vld [vmem:[#allocation14 + $0x30] sm:$0xff] }
 0x985   : > { %v2894_v27 = vpack.c.bf16 %v1822_v51, %v1820_v50  ;;  %v1836_v8 = vld [vmem:[#allocation14 + $0xa0] sm:$0xff]  ;;  %v2151_v50 = vld [vmem:[#allocation17 + $0x90] sm:$0xff]  ;;  %v2152_v51 = vld [vmem:[#allocation17 + $0x98] sm:$0xff] }
 0x986   : > { %2865 = vmatprep.subr.bf16.mxu1 %v2864_v52  ;;  %v1827_v52 = vld [vmem:[#allocation14 + $0x58] sm:$0xff] }
 0x987   : > { %2855 = vmatpush3.bf16.msra.mxu0 %v2854_v16  ;;  %2867 = vmatpush1.bf16.msra.mxu1 %v2866_v57  ;;  %v2896_v55 = vpack.c.bf16 %v1827_v52, %v1825_v53  ;;  %v1829_v57 = vld [vmem:[#allocation14 + $0x68] sm:$0xff]  ;;  %v2924_v52 = vpack.c.bf16 %v2152_v51, %v2151_v50 }
 0x988   : > { %2869 = vmatprep.subr.bf16.mxu1 %v2868_v60 }
 0x98b   : > { %2871 = vmatpush1.bf16.msra.mxu1 %v2870_v2  ;;  %v1832_v2 = vld [vmem:[#allocation14 + $0x80] sm:$0xff] }
 0x98c   : > { %2873 = vmatprep.subr.bf16.mxu1 %v2872_v3  ;;  %v1837_v3 = vld [vmem:[#allocation14 + $0xa8] sm:$0xff] }
 0x98d   : > { %v2908_v7 = vpack.c.bf16 %v1839_v4, %v1837_v3 }
 0x98f   : > { %2875 = vmatpush1.bf16.msra.mxu1 %v2874_v9  ;;  %v1838_v9 = vld [vmem:[#allocation14 + $0xb0] sm:$0xff] }
 0x990   : > { %2877 = vmatprep.subr.bf16.mxu1 %v2876_v10  ;;  %v1841_v10 = vld [vmem:[#allocation14 + $0xc8] sm:$0xff]  ;;  %v2910_v11 = vpack.c.bf16 %v1838_v9, %v1836_v8  ;;  %v2159_v8 = vld [vmem:[#allocation17 + $0xd0] sm:$0xff]  ;;  %v2160_v9 = vld [vmem:[#allocation17 + $0xd8] sm:$0xff] }
 0x991   : > { %v2912_v13 = vpack.c.bf16 %v1843_v40, %v1841_v10  ;;  %v2940_v40 = vpack.c.bf16 %v2160_v9, %v2159_v8 }
 0x993   : > { %2879 = vmatpush1.bf16.msra.mxu1 %v2878_v15  ;;  %v1842_v15 = vld [vmem:[#allocation14 + $0xd0] sm:$0xff] }
 0x994   : > { %2881 = vmatprep.subr.bf16.mxu1 %v2880_v17  ;;  %v1845_v17 = vld [vmem:[#allocation14 + $0xe8] sm:$0xff]  ;;  %v2914_v20 = vpack.c.bf16 %v1842_v15, %v1840_v14  ;;  %v2161_v14 = vld [vmem:[#allocation17 + $0xe0] sm:$0xff] }
 0x995   : > { %v2916_v6 = vpack.c.bf16 %v1847_v19, %v1845_v17  ;;  %v2162_v15 = vld [vmem:[#allocation17 + $0xe8] sm:$0xff] }
 0x996   : > { %v2944_v19 = vpack.c.bf16 %v2162_v15, %v2161_v14 }
 0x997   : > { %2883 = vmatpush1.bf16.msra.mxu1 %v2882_v22  ;;  %v1846_v22 = vld [vmem:[#allocation14 + $0xf0] sm:$0xff] }
 0x998   : > { %2885 = vmatprep.subr.bf16.mxu1 %v2884_v23  ;;  %v2918_v23 = vpack.c.bf16 %v1846_v22, %v1844_v21  ;;  %v2163_v21 = vld [vmem:[#allocation17 + $0xf0] sm:$0xff]  ;;  %v2164_v22 = vld [vmem:[#allocation17 + $0xf8] sm:$0xff] }
 0x99b   : > { %2887 = vmatpush1.bf16.msra.mxu1 %v2886_v26  ;;  %v2025_v26 = vshrl.u32 %v2024_v25, 7  ;;  %v2948_v25 = vpack.c.bf16 %v2164_v22, %v2163_v21 }
 0x9de   : > { %v1708_v33 = vpop.permute.xlu1 %1707 }
 0x9f7   : > { %v1624_v18 = vpop.xlane.xlu0 %1623 }
 0x9f8   : > { %3163 = vrcp.f32 %v1624_v18  ;;  %v1817_v18 = vld [vmem:[#allocation14 + $0x8] sm:$0xff] }
 0x9f9   : > { %v2888_v39 = vpack.c.bf16 %v1819_v38, %v1817_v18 }
 0x9fb   : > { %v1124_v28 = vpop.xlane.xlu0 %1123  ;;  %2889 = vmatprep.subr.bf16.mxu1 %v2888_v39 }
 0x9fc   : > { %3165 = vrcp.f32 %v1124_v28  ;;  %v4260_v28 = vsub.s32 0, %v2025_v26 }
 0x9ff   : > { %v1712_v30 = vpop.permute.xlu0 %1711 }
 0xa02   : > { %v3164_v58 = vpop.eup %3163 }
 0xa06   : > { %v3166_v29 = vpop.eup %3165 }
 0xa07   : > { %v1199_v31 = vmul.f32 %v3166_v29, %v4203_v12  ;;  %v2479_v12 = vld [vmem:[%s4475_s29] ss:$0 sm:$0xff]  ;;  %s2261_s29 = sshll.u32 %s4070_s9, 4  ;;  %s4301_s29 = int_to_ptr.vmem [resolvable:$true] %s2261_s29 }
 0xa08   : > { %v2022_v29 = vld [vmem:[%s4476_s3] sm:$0x3]  ;;  %s4481_s3 = sld [smem:[#allocation49_spill]]  ;;  %s3407_s5 = scalar_lea.vmem %s4301_s29, 128 }
 0xa09   : > { %v1718_v34 = vsel %vm1041_vm6, %v1199_v31, %v1708_v33  ;;  %v4265_v31 = vsub.s32 1, %v2025_v26  ;;  %v2027_v33 = vrot.slane %v2022_v29, %v4260_v28  ;;  %v2147_v26 = vld [vmem:[#allocation17 + $0x70] sm:$0xff]  ;;  %p3408_p1 = scmp.ne.s32.totalorder %s4301_s29, %s3407_s5 }
 0xa0a   : > { %v1720_v36 = vsel %vm1719_vm8, %v1718_v34, %v1712_v30 }
 0xa0b   : > { %v2031_v34 = vrot.slane %v2022_v29, %v4265_v31  ;;  %v2148_v29 = vld [vmem:[#allocation17 + $0x78] sm:$0xff]  ;;  %p3409_p13 = pnand %p3408_p1, %p4482_p3 }
 0xa0d   : > { %p3410_p8 = pneg %p3409_p13 }
 0xa3c   : > { %v1701_v59 = vpop.f32.mrb[6].mxu0 }
 0xa3d   : > { %v1705_v62 = vmul.f32 %v3164_v58, %v1701_v59  ;;  %v2696_v32 = vpop.f32.mrb[7].mxu0  ;;  %v1831_v58 = vld [vmem:[#allocation14 + $0x78] sm:$0xff]  ;;  %v2898_v59 = vpack.c.bf16 %v1826_v35, %v1824_v56  ;;  %v2153_v56 = vld [vmem:[#allocation17 + $0xa0] sm:$0xff]  ;;  %v2154_v35 = vld [vmem:[#allocation17 + $0xa8] sm:$0xff] }
 0xa3e   : > { %v2900_v60 = vpack.c.bf16 %v1831_v58, %v1829_v57  ;;  %v1835_v32 = vld [vmem:[#allocation14 + $0x98] sm:$0xff]  ;;  %v2928_v58 = vpack.c.bf16 %v2154_v35, %v2153_v56 }
 0xa3f   : > { %1715 = vrot.lane.b32.xlu1 %v1705_v62, %s3570_s28  ;;  %v1833_v62 = vld [vmem:[#allocation14 + $0x88] sm:$0xff]  ;;  %s2257_s28 = sadd.s32 %s4474_s14, %s2482_s12  ;;  %s2246_s14 = scalar_lea.sflag [#allocation7], %s4037_s21 }
 0xa40   : > { %v2904_v1 = vpack.c.bf16 %v1835_v32, %v1833_v62  ;;  %v2932_v32 = vpack.c.bf16 %v2156_v63, %v2155_v61  ;;  %s2483_s7 = sshll.u32 %s2257_s28, 7 }
 0xa41   : > { %s4299_s20 = scalar_lea.hbm %s4481_s3, %s2483_s7 }
 0xab1   : > { %v1716_v37 = vpop.permute.xlu1 %1715 }
 0xab2   : > { %v1722_v16 = vsel %vm1721_vm9, %v1720_v36, %v1716_v37 }
 0xab3   : > { %2730 = vmatmul.mubr.f32.vlgmr.msra.gmra.mrb[8].mxu0 %v1722_v16 }
 0xb86   : > { %v1812_v45 = vpop.f32.mrb[8].mxu0 }
 0xb87   : > { %v1813_v47 = vadd.f32 %v2479_v12, %v1812_v45  ;;  %v2731_v48 = vpop.f32.mrb[9].mxu0  ;;  %v2149_v45 = vld [vmem:[#allocation17 + $0x80] sm:$0xff] }
 0xb89   : > { %1945 = vmatmul.mubr.f32.vlgmr.msra.gmra.mrb[8].mxu1 %v1813_v47  ;;  %v2133_v47 = vld [vmem:[#allocation17] sm:$0xff] }
 0xb8a   : > { %2891 = vmatpush1.bf16.msra.mxu1 %v2890_v46  ;;  %2015 = vmatprep.mubr.f32.mxu1 %v3569_v54  ;;  %v1834_v54 = vld [vmem:[#allocation14 + $0x90] sm:$0xff]  ;;  %v2150_v46 = vld [vmem:[#allocation17 + $0x88] sm:$0xff] }
 0xb8b   : > { %2893 = vmatprep.subr.bf16.mxu1 %v2892_v49  ;;  %v2906_v5 = vpack.c.bf16 %v1834_v54, %v1832_v2  ;;  %v2920_v48 = vpack.c.bf16 %v2150_v46, %v2149_v45  ;;  %v2134_v49 = vld [vmem:[#allocation17 + $0x8] sm:$0xff]  ;;  %v2157_v2 = vld [vmem:[#allocation17 + $0xc0] sm:$0xff] }
 0xb8c   : > { %v2922_v53 = vpack.c.bf16 %v2134_v49, %v2133_v47  ;;  %v2158_v54 = vld [vmem:[#allocation17 + $0xc8] sm:$0xff] }
 0xb8d   : > { %2921 = vmatprep.subr.bf16.mxu0 %v2920_v48  ;;  %v2936_v4 = vpack.c.bf16 %v2158_v54, %v2157_v2 }
 0xb8e   : > { %2895 = vmatpush1.bf16.msra.mxu1 %v2894_v27  ;;  %v2135_v27 = vld [vmem:[#allocation17 + $0x10] sm:$0xff]  ;;  %2923 = vmatpush3.bf16.msra.mxu0 %v2922_v53 }
 0xb8f   : > { %2897 = vmatprep.subr.bf16.mxu1 %v2896_v55  ;;  %v2136_v55 = vld [vmem:[#allocation17 + $0x18] sm:$0xff]  ;;  %2925 = vmatprep.subr.bf16.mxu0 %v2924_v52 }
 0xb90   : > { %v2926_v57 = vpack.c.bf16 %v2136_v55, %v2135_v27 }
 0xb92   : > { %2899 = vmatpush1.bf16.msra.mxu1 %v2898_v59  ;;  %v2137_v59 = vld [vmem:[#allocation17 + $0x20] sm:$0xff]  ;;  %2927 = vmatpush3.bf16.msra.mxu0 %v2926_v57 }
 0xb93   : > { %2901 = vmatprep.subr.bf16.mxu1 %v2900_v60  ;;  %v2138_v60 = vld [vmem:[#allocation17 + $0x28] sm:$0xff]  ;;  %2929 = vmatprep.subr.bf16.mxu0 %v2928_v58 }
 0xb94   : > { %v2930_v62 = vpack.c.bf16 %v2138_v60, %v2137_v59 }
 0xb96   : > { %2903 = vmatpush1.bf16.msra.mxu1 %v2902_v0  ;;  %v2139_v0 = vld [vmem:[#allocation17 + $0x30] sm:$0xff]  ;;  %2931 = vmatpush3.bf16.msra.mxu0 %v2930_v62 }
 0xb97   : > { %2905 = vmatprep.subr.bf16.mxu1 %v2904_v1  ;;  %v2140_v1 = vld [vmem:[#allocation17 + $0x38] sm:$0xff]  ;;  %2933 = vmatprep.subr.bf16.mxu0 %v2932_v32 }
 0xb98   : > { %v2934_v3 = vpack.c.bf16 %v2140_v1, %v2139_v0 }
 0xb9a   : > { %2907 = vmatpush1.bf16.msra.mxu1 %v2906_v5  ;;  %v2141_v5 = vld [vmem:[#allocation17 + $0x40] sm:$0xff]  ;;  %2935 = vmatpush3.bf16.msra.mxu0 %v2934_v3 }
 0xb9b   : > { %2909 = vmatprep.subr.bf16.mxu1 %v2908_v7  ;;  %v2142_v7 = vld [vmem:[#allocation17 + $0x48] sm:$0xff]  ;;  %2937 = vmatprep.subr.bf16.mxu0 %v2936_v4 }
 0xb9c   : > { %v2938_v10 = vpack.c.bf16 %v2142_v7, %v2141_v5 }
 0xb9e   : > { %2911 = vmatpush1.bf16.msra.mxu1 %v2910_v11  ;;  %v2143_v11 = vld [vmem:[#allocation17 + $0x50] sm:$0xff]  ;;  %2939 = vmatpush3.bf16.msra.mxu0 %v2938_v10 }
 0xb9f   : > { %2913 = vmatprep.subr.bf16.mxu1 %v2912_v13  ;;  %v2144_v13 = vld [vmem:[#allocation17 + $0x58] sm:$0xff]  ;;  %2941 = vmatprep.subr.bf16.mxu0 %v2940_v40 }
 0xba0   : > { %v2942_v17 = vpack.c.bf16 %v2144_v13, %v2143_v11 }
 0xba2   : > { %2915 = vmatpush1.bf16.msra.mxu1 %v2914_v20  ;;  %v2145_v20 = vld [vmem:[#allocation17 + $0x60] sm:$0xff]  ;;  %2943 = vmatpush3.bf16.msra.mxu0 %v2942_v17 }
 0xba3   : > { %2917 = vmatprep.subr.bf16.mxu1 %v2916_v6  ;;  %v2146_v6 = vld [vmem:[#allocation17 + $0x68] sm:$0xff]  ;;  %2945 = vmatprep.subr.bf16.mxu0 %v2944_v19 }
 0xba6   : > { %2919 = vmatpush1.bf16.msra.mxu1 %v2918_v23  ;;  %v2946_v23 = vpack.c.bf16 %v2146_v6, %v2145_v20  ;;  %v3573_v6 = vmov -1.0  }
 0xba8   : > { %2947 = vmatpush3.bf16.msra.mxu0 %v2946_v23 }
 0xba9   : > { %2016 = vmatmul.mubr.f32.vlgmr.msra.gmra.mrb[8].mxu1 %v4257_v24  ;;  %2949 = vmatprep.subr.bf16.mxu0 %v2948_v25 }
 0xc7c   : > { %v2017_v30 = vpop.f32.mrb[8].mxu1 }
 0xc7d   : > { %v2034_v36 = vadd.f32 %v2027_v33, %v2017_v30  ;;  %v2019_v37 = vpop.f32.mrb[9].mxu1  ;;  %v2950_v33 = vpack.c.bf16 %v2148_v29, %v2147_v26 }
 0xc7e   : > { %v2035_v16 = vadd.f32 %v2031_v34, %v2019_v37  ;;  %v2053_v37 = vld [vmem:[%s4477_s0] sm:$0x3]  ;;  %s3574_s0 = smov [#allocation19]  }
 0xc7f   : > { %2951 = vmatpush3.bf16.msra.mxu0 %v2950_v33  ;;  %s3411_s22 = sshll.u32 %s3574_s0, 4  ;;  %s3412_s22 = int_to_ptr.vmem [resolvable:$false] %s3411_s22 }
 0xc80   : > { %v2036_v18 = vadd.f32 %v2035_v16, %v2034_v36  ;;  %s3413_s26 = scalar_lea.vmem %s3412_s22, 256  ;;  %p3414_p12 = scmp.lt.s32.totalorder %s4301_s29, %s3412_s22 }
 0xc81   : > { %p3415_p7 = scmp.lt.s32.totalorder %s3413_s26, %s3407_s5 }
 0xc82   : > { %2037 = vadd.xlane.f32.xlu1 %v2036_v18  ;;  %v2058_v18 = vrot.slane %v2053_v37, %v4260_v28 }
 0xc83   : > { %p3416_p10 = por %p3415_p7, %p3414_p12 }
 0xc85   : > { %p3417_p4 = pnand %p3416_p10, %p3410_p8 }
 0xd0f   : > { %v2038_v38 = vpop.xlane.xlu1 %2037 }
 0xd10   : > { %v2040_v39 = vmul.f32 0.00390625, %v2038_v38  ;;  %v2062_v38 = vrot.slane %v2053_v37, %v4265_v31 }
 0xd12   : > { %v4269_v41 = vsub.f32 %v2034_v36, %v2040_v39  ;;  %v4271_v42 = vsub.f32 %v2035_v16, %v2040_v39  ;;  %v2067_v16 = vld [vmem:[%s4478_s19] sm:$0x3] }
 0xd13   : > { %v2076_v45 = vrot.slane %v2067_v16, %v4265_v31 }
 0xd14   : > { %v2043_v12 = vmul.f32 %v4269_v41, %v4269_v41  ;;  %v2044_v43 = vmul.f32 %v4271_v42, %v4271_v42 }
 0xd16   : > { %v2045_v44 = vadd.f32 %v2044_v43, %v2043_v12 }
 0xd18   : > { %2046 = vadd.xlane.f32.xlu0 %v2045_v44  ;;  %v2072_v44 = vrot.slane %v2067_v16, %v4260_v28 }
 0xda5   : > { %v2047_v34 = vpop.xlane.xlu0 %2046 }
 0xda6   : > { %v2048_v30 = vmul.f32 0.00390625, %v2047_v34 }
 0xda8   : > { %v2049_v36 = vadd.f32 1e-05, %v2048_v30 }
 0xdaa   : > { %3167 = vrsqrt.f32 %v2049_v36 }
 0xdb4   : > { %v3168_v39 = vpop.eup %3167 }
 0xdb5   : > { %v2051_v12 = vmul.f32 %v3168_v39, %v4269_v41  ;;  %v2052_v43 = vmul.f32 %v3168_v39, %v4271_v42  ;;  %v2480_v39 = vld [vmem:[%s4480_s8] ss:$0 sm:$0xff] }
 0xdb7   : > { %v2065_v46 = vmul.f32 %v2058_v18, %v2051_v12  ;;  %v2066_v47 = vmul.f32 %v2062_v38, %v2052_v43 }
 0xdb9   : > { %v2079_v48 = vadd.f32 %v2072_v44, %v2065_v46  ;;  %v2080_v49 = vadd.f32 %v2076_v45, %v2066_v47 }
 0xdbb   : > { %v2083_v50 = vmul.f32 0.70710677, %v2079_v48  ;;  %v2084_v51 = vmul.f32 0.70710677, %v2080_v49  ;;  %v2081_v29 = vmul.f32 0.5, %v2079_v48  ;;  %v2082_v34 = vmul.f32 0.5, %v2080_v49 }
 0xdbd   : > { %v2089_v53 = vand.u32 2147483647, %v2083_v50  ;;  %v2090_v52 = vand.u32 2147483647, %v2084_v51  ;;  %vm2085_vm10 = vcmp.ge.f32.partialorder %v2083_v50, 0.0  ;;  %vm2086_vm11 = vcmp.ge.f32.partialorder %v2084_v51, 0.0 }
 0xdbe   : > { %v2087_v21 = vsel %vm2085_vm10, 1.0, %v3573_v6  ;;  %v2088_v23 = vsel %vm2086_vm11, 1.0, %v3573_v6 }
 0xdbf   : > { %v2091_v27 = vmul.f32 0.3275911, %v2089_v53  ;;  %v2092_v55 = vmul.f32 0.3275911, %v2090_v52  ;;  %v2115_v41 = vsub.f32 0.0, %v2089_v53  ;;  %v2116_v42 = vsub.f32 0.0, %v2090_v52 }
 0xdc1   : > { %v2093_v56 = vadd.f32 1.0, %v2091_v27  ;;  %v2094_v35 = vadd.f32 1.0, %v2092_v55  ;;  %v2117_v28 = vmul.f32 %v2115_v41, %v2089_v53  ;;  %v2118_v31 = vmul.f32 %v2116_v42, %v2090_v52 }
 0xdc3   : > { %3169 = vrcp.f32 %v2093_v56  ;;  %v2119_v62 = vmul.f32 1.442695, %v2117_v28  ;;  %v2121_v32 = vmul.f32 1.442695, %v2118_v31 }
 0xdc4   : > { %3171 = vrcp.f32 %v2094_v35 }
 0xdc5   : > { %3173 = vpow2.f32 %v2119_v62 }
 0xdc6   : > { %3175 = vpow2.f32 %v2121_v32 }
 0xdcd   : > { %v3170_v57 = vpop.eup %3169 }
 0xdce   : > { %v3172_v58 = vpop.eup %3171  ;;  %v2097_v59 = vmul.f32 1.0614054, %v3170_v57 }
 0xdcf   : > { %v2098_v60 = vmul.f32 1.0614054, %v3172_v58  ;;  %v3174_v13 = vpop.eup %3173 }
 0xdd0   : > { %v2099_v61 = vadd.f32 -1.4531521, %v2097_v59  ;;  %v3176_v15 = vpop.eup %3175 }
 0xdd1   : > { %v2100_v63 = vadd.f32 -1.4531521, %v2098_v60 }
 0xdd2   : > { %v2101_v0 = vmul.f32 %v3170_v57, %v2099_v61 }
 0xdd3   : > { %v2102_v1 = vmul.f32 %v3172_v58, %v2100_v63 }
 0xdd4   : > { %v2103_v2 = vadd.f32 1.4214138, %v2101_v0 }
 0xdd5   : > { %v2104_v54 = vadd.f32 1.4214138, %v2102_v1 }
 0xdd6   : > { %v2105_v3 = vmul.f32 %v3170_v57, %v2103_v2 }
 0xdd7   : > { %v2106_v4 = vmul.f32 %v3172_v58, %v2104_v54 }
 0xdd8   : > { %v2107_v5 = vadd.f32 -0.28449672, %v2105_v3 }
 0xdd9   : > { %v2108_v7 = vadd.f32 -0.28449672, %v2106_v4 }
 0xdda   : > { %v2109_v8 = vmul.f32 %v3170_v57, %v2107_v5 }
 0xddb   : > { %v2110_v9 = vmul.f32 %v3172_v58, %v2108_v7 }
 0xddc   : > { %v2111_v10 = vadd.f32 0.2548296, %v2109_v8 }
 0xddd   : > { %v2112_v40 = vadd.f32 0.2548296, %v2110_v9 }
 0xdde   : > { %v2113_v11 = vmul.f32 %v3170_v57, %v2111_v10 }
 0xddf   : > { %v2114_v14 = vmul.f32 %v3172_v58, %v2112_v40 }
 0xde0   : > { %v2123_v17 = vmul.f32 %v3174_v13, %v2113_v11 }
 0xde1   : > { %v2124_v19 = vmul.f32 %v3176_v15, %v2114_v14 }
 0xde2   : > { %v2125_v20 = vsub.f32 1.0, %v2123_v17 }
 0xde3   : > { %v2126_v22 = vsub.f32 1.0, %v2124_v19 }
 0xde4   : > { %v2127_v25 = vmul.f32 %v2125_v20, %v2087_v21 }
 0xde5   : > { %v2128_v26 = vmul.f32 %v2126_v22, %v2088_v23 }
 0xde6   : > { %v2129_v33 = vadd.f32 1.0, %v2127_v25 }
 0xde7   : > { %v2130_v30 = vadd.f32 1.0, %v2128_v26 }
 0xde8   : > { %v2131_v36 = vmul.f32 %v2129_v33, %v2081_v29 }
 0xde9   : > { %v2132_v37 = vmul.f32 %v2130_v30, %v2082_v34 }
 0xdeb   : > { %2229 = vmatprep.mubr.f32.mxu0 %v2132_v37 }
 0xdec   : > { %2230 = vmatmul.mubr.f32.vlgmr.msra.gmra.mrb[10].mxu0 %v2131_v36 }
 0xebf   : > { %v2587_v16 = vpop.f32.mrb[10].mxu0 }
 0xec0   : > { %v2588_v18 = vpop.f32.mrb[11].mxu0 }
 0xec1   : > { %v2589_v38 = vadd.f32 %v2588_v18, %v2587_v16 }
 0xec3   : > { %v2235_v12 = vadd.f32 %v2589_v38, %v4257_v24 }
 0xec5   : > { %v2243_v43 = vadd.f32 %v2480_v39, %v2235_v12 }
 0xec7   : > { %2244 = vst [vmem:[%s4070_s9] sm:$0xff] %v2243_v43 }
 0xec8   : > { %3420 = shalt.err (!%p3417_p4)
}
 0xec9   : > { %s3421_s21 = scalar_lea.hbm %s4299_s20, 128  ;;  %s3425_s13 = scalar_lea.hbm %s4481_s3, 512 }
 0xeca   : > { %p3422_p5 = scmp.ne.s32.totalorder %s4299_s20, %s3421_s21  ;;  %p3426_p0 = scmp.lt.u32.totalorder %s4299_s20, %s4481_s3 }
 0xecb   : > { %p3427_p2 = scmp.lt.u32.totalorder %s3425_s13, %s3421_s21  ;;  %p3429_p1 = scmp.lt.u32.totalorder %s3421_s21, %s4299_s20 }
 0xecc   : > { %p3423_p11 = pnand %p3422_p5, %p4482_p3 }
 0xecd   : > { %p3428_p6 = por %p3427_p2, %p3426_p0 }
 0xece   : > { %p3424_p9 = pneg %p3423_p11 }
 0xecf   : > { %p3430_p13 = por %p3429_p1, %p3428_p6 }
 0xed1   : > { %p3431_p8 = pnand %p3430_p13, %p3424_p9 }
 0xed3   : > { %3434 = shalt.err (!%p3431_p8)
}
 0xed4   : > { %2980 = dma.vmem_to_hbm [thread:$0]  (%p4482_p3), %s4301_s29, 128, %s4299_s20, %s2246_s14  }
 0xed5 PF: > { %p3023_p12 = scmp.ge.s32.totalorder %s3545_s23, 2  ;;  %s2273_s11 = sand.u32 1, %s3517_s16  }
 0xed6   : > { %p4483_p7 = scmp.ne.s32.totalorder %s4449_s6, 0  ;;  %s2274_s25 = scalar_lea.sflag [#allocation7], %s2273_s11 }
 0xed8   : > { %p3009_p10 = pnand %p3023_p12, %p4483_p7 }
 0xeda   : > { %3500 = dma.done.wait (!%p3009_p10), %s2274_s25, 128  }
 0xedb   : > { %3502 = vsyncadd (!%p3009_p10), %s2274_s25, 4294967168  ;;  %s36_s23 = sadd.s32 1, %s3545_s23   ;;  %s4484_s29 = sld [smem:[#allocation26_spill]] }
 0xedc   : > { %p33_p4 = scmp.ge.s32.totalorder %s36_s23, 6   ;;  %s4485_s2 = smov %s3951_s30 }
 0xedd   : > { %s4486_s19 = sld [smem:[#allocation29_spill]]  ;;  %s4487_s20 = sld [smem:[#allocation30_spill]] }
 0xede   : > { %s4488_s21 = sld [smem:[#allocation33_spill]]  ;;  %s4489_s22 = sld [smem:[#allocation34_spill]] }
 0xedf   : > { %s4490_s30 = smov %s3513_s15  ;;  %s4491_s15 = smov %s4485_s2 }
 0xee0   : > { %s4492_s16 = smov %s3521_s17  ;;  %s4493_s17 = smov %s3525_s18 }
 0xee1   : > { %s4494_s18 = smov %s3954_s1  ;;  %35 = sbr.rel (!%p33_p4) target bundleno = 30 (0x1e), region = 171 }
 0xee8   :  { %2279 = vsyncpa [#allocation6], 1 }
 0xee9   :  { %2281 = vsyncpa [#allocation6 + $0x1], 1 }
 0xeea   :  { %2282 = vsyncpa [#allocation9], 1 }
 0xeeb   :  { %2284 = vsyncpa [#allocation9 + $0x1], 1 }
 0xeec   :  { %2285 = vsyncpa [#allocation12], 1 }
 0xeed   :  { %2286 = vsyncpa [#allocation15], 1 }
 0xeee   :  { %2287 = vsyncpa [#allocation18], 1 }
 0xeef   :  { %2288 = vsyncpa [#allocation7], 1 }
 0xef0   :  { %2290 = vsyncpa [#allocation7 + $0x1], 1 }

</bundles_post_ra>
